<compile_context>
chip_gen: v7x
topology: tpu7x:2x2x1
jax: 0.10.0
libtpu: 0.0.40
codegen_flags: <defaults>
</compile_context>

<pallas_src>
import math

import jax
import jax.numpy as jnp
from jax import lax
from jax.experimental import pallas as pl
from jax.experimental.pallas import tpu as pltpu


def _pick_batch_block(n, h, target_rows=256):
    """Largest divisor nb of n with nb*h <= target_rows (fill the 256-row MXU)."""
    best = 1
    for d in range(1, n + 1):
        if n % d == 0 and d * h <= target_rows:
            best = d
    return best


def _group_norm_packed(a, nb, h, sel_ref, exp_ref, eps):
    """GroupNorm (affine=False) on a lane-packed (nb*h, W*Cpad) slab, per image.

    sel: (W*Cpad, G) 0/1 selector (padded channels select no group).
    exp: (G, W*Cpad) expander holding 1/(H*W*Cg) for real channels, 0 for pad.
    Statistics matmuls stay in f32 (do not bf16 the stats path).
    """
    wc = a.shape[-1]
    a3 = a.reshape(nb, h, wc)
    s1 = jnp.sum(a3, axis=1)                       # (nb, wc) per-image lane sums
    s2 = jnp.sum(a3 * a3, axis=1)                  # (nb, wc) per-image lane sumsq
    s = jnp.concatenate([s1, s2], axis=0)          # (2*nb, wc): fused moments slab
    m = jnp.dot(jnp.dot(s, sel_ref[...], preferred_element_type=jnp.float32),
                exp_ref[...], preferred_element_type=jnp.float32)   # (2*nb, wc)
    mean = m[:nb].reshape(nb, 1, wc)
    msq = m[nb:].reshape(nb, 1, wc)
    var = jnp.maximum(msq - mean * mean, 0.0)      # clamp one-pass E[x^2]-E[x]^2
    return ((a3 - mean) * lax.rsqrt(var + eps)).reshape(nb * h, wc)


def _make_kernel(eps, nb, h, with_inj):
    bf16, f32 = jnp.bfloat16, jnp.float32

    def mm(a, w_ref):
        # bf16 MXU operands, f32 accumulate.
        return jnp.dot(a.astype(bf16), w_ref[...], preferred_element_type=f32)

    def kernel(*refs):
        if with_inj:
            (x_ref, inj_ref, b1_ref, b2a_ref, b2b_ref, b2c_ref, b3_ref,
             selp_ref, expp_ref, selc_ref, expc_ref, out_ref) = refs
        else:
            (x_ref, b1_ref, b2a_ref, b2b_ref, b2c_ref, b3_ref,
             selp_ref, expp_ref, selc_ref, expc_ref, out_ref) = refs
            inj_ref = None

        mrows = nb * h
        wcx = x_ref.shape[-1]                       # W*Cpad (residual width)
        x = x_ref[...].reshape(mrows, wcx)          # lane-dense (Nb*H, W*Cpad)

        # ---- conv1 (1x1) as block-diag matmul + injection + GN1 + ReLU ------
        h1 = mm(x, b1_ref)                          # (Nb*H, W*Ppad)
        if with_inj:
            h1 = h1 + inj_ref[...].reshape(mrows, h1.shape[-1])
        h1 = _group_norm_packed(h1, nb, h, selp_ref, expp_ref, eps)
        h1 = jnp.maximum(h1, 0.0)
        wcp = h1.shape[-1]

        # ---- conv2 (3x3, stride=1, pad=1) + GN2 + ReLU -----------------------
        # Vertical taps: sublane rolls on the flat slab; rows that crossed an
        # image boundary are zeroed with per-image (nb, h, 1) row masks.
        # Horizontal taps + left/right zero pad live in the banded weights.
        hrow = lax.broadcasted_iota(jnp.int32, (nb, h, 1), 1)
        up = jnp.where(hrow > 0,
                       pltpu.roll(h1, shift=1, axis=0).reshape(nb, h, wcp),
                       0.0).reshape(mrows, wcp)                       # h[r-1]
        dn = jnp.where(hrow < h - 1,
                       pltpu.roll(h1, shift=mrows - 1, axis=0).reshape(nb, h, wcp),
                       0.0).reshape(mrows, wcp)                       # h[r+1]
        h2 = mm(up, b2a_ref) + mm(h1, b2b_ref) + mm(dn, b2c_ref)
        h2 = _group_norm_packed(h2, nb, h, selp_ref, expp_ref, eps)
        h2 = jnp.maximum(h2, 0.0)

        # ---- conv3 (1x1) + GN3 + residual add + ReLU -------------------------
        h3 = mm(h2, b3_ref)                         # (Nb*H, W*Cpad)
        h3 = _group_norm_packed(h3, nb, h, selc_ref, expc_ref, eps)
        out_ref[...] = jnp.maximum(h3 + x, 0.0).reshape(nb, h, wcx)

    return kernel


def bottleneck_group_pallas(x_nchw, injection_nchw, weight1, weight2, weight3,
                            num_groups=4, eps=1e-5):
    """BottleneckGroup forward (downsample=None, stride=1). x: (N, planes*4, H, W)."""
    N, Cin, H, W = x_nchw.shape
    P = weight1.shape[0]
    Cout = weight3.shape[0]
    G = num_groups
    assert Cout == Cin, "residual add without downsample needs inplanes == planes*4"
    assert P % G == 0 and Cout % G == 0
    f32, bf16 = jnp.float32, jnp.bfloat16

    # Channel padding so W*Cpad is a multiple of 128 (lane-dense slabs/stores).
    m = 128 // math.gcd(W, 128)
    pad_c = lambda c: -(-c // m) * m
    Pp, Cp = pad_c(P), pad_c(Cin)                   # Cin == Cout

    nb = _pick_batch_block(N, H)                    # images per grid step
    grid = (N // nb,)
    with_inj = injection_nchw is not None

    # ---- activations: NCHW -> lane-packed (N, H, W*Cpad); pad channels with 0.
    def pack(a, cpad):
        n, c = a.shape[0], a.shape[1]
        a = jnp.transpose(a, (0, 2, 3, 1)).astype(f32)             # (N, H, W, C)
        a = jnp.pad(a, ((0, 0), (0, 0), (0, 0), (0, cpad - c)))
        return a.reshape(n, H, W * cpad)

    x_p = pack(x_nchw, Cp)

    # ---- weights -> packed-layout matmul operands, stored bf16 (full-rate MXU).
    def zpad(a, r, c):
        return jnp.zeros((r, c), f32).at[:a.shape[0], :a.shape[1]].set(a.astype(f32))

    eye_w = jnp.eye(W, dtype=f32)
    b1 = jnp.kron(eye_w, zpad(weight1[:, :, 0, 0].T, Cp, Pp)).astype(bf16)
    b3 = jnp.kron(eye_w, zpad(weight3[:, :, 0, 0].T, Pp, Cp)).astype(bf16)

    # Banded 3x3 weight, one (W*Ppad, W*Ppad) block per vertical tap kh; each
    # block carries the 3 horizontal taps and the implicit left/right zero pad.
    b2_blocks = []
    for kh in range(3):
        blk = jnp.zeros((W * Pp, W * Pp), f32)
        for kw in range(3):
            s = jnp.eye(W, k=-(kw - 1), dtype=f32)
            blk = blk + jnp.kron(s, zpad(weight2[:, :, kh, kw].T, Pp, Pp))
        b2_blocks.append(blk.astype(bf16))
    b2a, b2b, b2c = b2_blocks

    # ---- GroupNorm selector / expander matrices (f32 stats path; pad -> no group).
    def gn_mats(c, cpad):
        cg = c // G
        ch = jnp.arange(cpad)
        onehot = ((ch[:, None] // cg == jnp.arange(G)[None, :]) &
                  (ch[:, None] < c)).astype(f32)       # (cpad, G)
        sel = jnp.tile(onehot, (W, 1))                 # (W*cpad, G)
        exp = jnp.tile(onehot.T, (1, W)) / (H * W * cg)  # (G, W*cpad)
        return sel, exp

    sel_p, exp_p = gn_mats(P, Pp)
    sel_c, exp_c = gn_mats(Cout, Cp)

    img3 = lambda i: (i, 0, 0)      # per image-block
    const = lambda i: (0, 0)        # same block every step -> stays VMEM-resident

    inputs = [x_p]
    in_specs = [pl.BlockSpec((nb, H, W * Cp), img3)]
    if with_inj:
        inj = jnp.broadcast_to(injection_nchw, (N, P, H, W))
        inputs.append(pack(inj, Pp))
        in_specs.append(pl.BlockSpec((nb, H, W * Pp), img3))
    for arr in (b1, b2a, b2b, b2c, b3, sel_p, exp_p, sel_c, exp_c):
        inputs.append(arr)
        in_specs.append(pl.BlockSpec(arr.shape, const))

    out_p = pl.pallas_call(
        _make_kernel(eps, nb, H, with_inj),
        out_shape=jax.ShapeDtypeStruct((N, H, W * Cp), f32),
        grid=grid,
        in_specs=in_specs,
        out_specs=pl.BlockSpec((nb, H, W * Cp), img3),
        compiler_params=pltpu.CompilerParams(
            dimension_semantics=("parallel",)),         # image blocks across TCs
    )(*inputs)

    out = out_p.reshape(N, H, W, Cp)[..., :Cout]
    return jnp.transpose(out, (0, 3, 1, 2))


def bottleneck_group_reference(x, injection, weight1, weight2, weight3,
                               num_groups=4, eps=1e-5):
    """Pure-JAX reference mirroring the PyTorch forward (GroupNorm, affine=False)."""
    if injection is None:
        injection = 0.0
    dn = ('NCHW', 'OIHW', 'NCHW')
    hp = lax.Precision.HIGHEST

    def gn(y):
        n, c, h, w = y.shape
        yg = y.reshape(n, num_groups, c // num_groups, h, w)
        mean = jnp.mean(yg, axis=(2, 3, 4), keepdims=True)
        var = jnp.var(yg, axis=(2, 3, 4), keepdims=True)
        return ((yg - mean) / jnp.sqrt(var + eps)).reshape(y.shape)

    out = lax.conv_general_dilated(x, weight1, (1, 1), 'VALID',
                                   dimension_numbers=dn, precision=hp) + injection
    out = jax.nn.relu(gn(out))
    out = lax.conv_general_dilated(out, weight2, (1, 1), ((1, 1), (1, 1)),
                                   dimension_numbers=dn, precision=hp)
    out = jax.nn.relu(gn(out))
    out = lax.conv_general_dilated(out, weight3, (1, 1), 'VALID',
                                   dimension_numbers=dn, precision=hp)
    out = gn(out)
    return jax.nn.relu(out + x)


if __name__ == "__main__":
    num_groups = 4

    def make_inputs(key, n, planes, hw):
        inplanes = planes * 4                     # expansion = 4
        ks = jax.random.split(key, 5)
        x = jax.random.normal(ks[0], (n, inplanes, hw, hw), jnp.float32)
        w1 = 0.1 * jax.random.normal(ks[1], (planes, inplanes, 1, 1), jnp.float32)
        w2 = 0.1 * jax.random.normal(ks[2], (planes, planes, 3, 3), jnp.float32)
        w3 = 0.1 * jax.random.normal(ks[3], (planes * 4, planes, 1, 1), jnp.float32)
        inj = 0.5 * jax.random.normal(ks[4], (n, planes, hw, hw), jnp.float32)
        return x, inj, w1, w2, w3

    def check(out, ref):
        assert out.shape == ref.shape
        err = float(jnp.max(jnp.abs(out - ref)))
        rel = float(jnp.sqrt(jnp.mean((out - ref) ** 2)) /
                    (jnp.sqrt(jnp.mean(ref ** 2)) + 1e-12))
        # bf16 MXU operands vs f32 HIGHEST-precision reference.
        ok = bool(jnp.allclose(out, ref, atol=1e-1, rtol=1e-1)) and rel < 3e-2
        assert ok, f"max abs err={err}, rel rms err={rel}"

    key = jax.random.PRNGKey(0)
    k1, k2 = jax.random.split(key)

    # Case 1: module-default forward path (injection=None), tiny shapes.
    x, _, w1, w2, w3 = make_inputs(k1, 2, 4, 16)
    out = jax.block_until_ready(
        bottleneck_group_pallas(x, None, w1, w2, w3, num_groups=num_groups))
    ref = bottleneck_group_reference(x, None, w1, w2, w3, num_groups=num_groups)
    check(out, ref)

    # Case 2: injection provided, larger batch -> 16 images per grid step
    # (256-row MXU matmuls) and grid=(2,) so both v7x TensorCores get work.
    x, inj, w1, w2, w3 = make_inputs(k2, 32, 4, 16)
    out = jax.block_until_ready(
        bottleneck_group_pallas(x, inj, w1, w2, w3, num_groups=num_groups))
    ref = bottleneck_group_reference(x, inj, w1, w2, w3, num_groups=num_groups)
    check(out, ref)

    print("KERNEL_OK")
</pallas_src>

<mosaic_0001>
module attributes {stable_mosaic.version = 11 : i64} {
  func.func @kernel(%arg0: i32, %arg1: memref<2x16x256xf32, #tpu.memory_space<vmem>>, %arg2: memref<256x128xbf16, #tpu.memory_space<vmem>>, %arg3: memref<128x128xbf16, #tpu.memory_space<vmem>>, %arg4: memref<128x128xbf16, #tpu.memory_space<vmem>>, %arg5: memref<128x128xbf16, #tpu.memory_space<vmem>>, %arg6: memref<128x256xbf16, #tpu.memory_space<vmem>>, %arg7: memref<128x4xf32, #tpu.memory_space<vmem>>, %arg8: memref<4x128xf32, #tpu.memory_space<vmem>>, %arg9: memref<256x4xf32, #tpu.memory_space<vmem>>, %arg10: memref<4x256xf32, #tpu.memory_space<vmem>>, %arg11: memref<2x16x256xf32, #tpu.memory_space<vmem>>) attributes {dimension_semantics = [#tpu.dimension_semantics<parallel>], iteration_bounds = array<i64: 1>, scalar_prefetch = 0 : i64, scratch_operands = 0 : i64, tpu.core_type = #tpu.core_type<tc>, window_params = [{transform_indices = @transform_0, window_bounds = array<i64: 2, 16, 256>}, {pipeline_mode = #tpu.pipeline_mode<synchronous>, transform_indices = @transform_1, window_bounds = array<i64: 256, 128>}, {pipeline_mode = #tpu.pipeline_mode<synchronous>, transform_indices = @transform_2, window_bounds = array<i64: 128, 128>}, {pipeline_mode = #tpu.pipeline_mode<synchronous>, transform_indices = @transform_3, window_bounds = array<i64: 128, 128>}, {pipeline_mode = #tpu.pipeline_mode<synchronous>, transform_indices = @transform_4, window_bounds = array<i64: 128, 128>}, {pipeline_mode = #tpu.pipeline_mode<synchronous>, transform_indices = @transform_5, window_bounds = array<i64: 128, 256>}, {pipeline_mode = #tpu.pipeline_mode<synchronous>, transform_indices = @transform_6, window_bounds = array<i64: 128, 4>}, {pipeline_mode = #tpu.pipeline_mode<synchronous>, transform_indices = @transform_7, window_bounds = array<i64: 4, 128>}, {pipeline_mode = #tpu.pipeline_mode<synchronous>, transform_indices = @transform_8, window_bounds = array<i64: 256, 4>}, {pipeline_mode = #tpu.pipeline_mode<synchronous>, transform_indices = @transform_9, window_bounds = array<i64: 4, 256>}, {transform_indices = @transform_10, window_bounds = array<i64: 2, 16, 256>}]} {
    %c0 = arith.constant 0 : index
    %c0_0 = arith.constant 0 : index
    %c0_1 = arith.constant 0 : index
    %0 = vector.load %arg1[%c0, %c0_0, %c0_1] : memref<2x16x256xf32, #tpu.memory_space<vmem>>, vector<2x16x256xf32>
    %1 = vector.shape_cast %0 : vector<2x16x256xf32> to vector<32x256xf32>
    %2 = arith.truncf %1 : vector<32x256xf32> to vector<32x256xbf16>
    %c0_2 = arith.constant 0 : index
    %c0_3 = arith.constant 0 : index
    %3 = vector.load %arg2[%c0_2, %c0_3] : memref<256x128xbf16, #tpu.memory_space<vmem>>, vector<256x128xbf16>
    %cst = arith.constant dense<0.000000e+00> : vector<32x128xf32>
    %4 = tpu.matmul %2, %3, %cst {dimension_numbers = #tpu.dot_dimension_numbers<[1], [0], [0], [1], [0, 0, 1, 1], [], []>} : vector<32x256xbf16>, vector<256x128xbf16>, vector<32x128xf32> -> vector<32x128xf32>
    %5 = vector.shape_cast %4 : vector<32x128xf32> to vector<2x16x128xf32>
    %cst_4 = arith.constant dense<0.000000e+00> : vector<2x128xf32>
    %6 = vector.multi_reduction <add>, %5, %cst_4 [1] : vector<2x16x128xf32> to vector<2x128xf32>
    %7 = arith.mulf %5, %5 : vector<2x16x128xf32>
    %cst_5 = arith.constant dense<0.000000e+00> : vector<2x128xf32>
    %8 = vector.multi_reduction <add>, %7, %cst_5 [1] : vector<2x16x128xf32> to vector<2x128xf32>
    %9 = tpu.concatenate %6, %8 in 0 : vector<2x128xf32>, vector<2x128xf32> -> vector<4x128xf32>
    %c0_6 = arith.constant 0 : index
    %c0_7 = arith.constant 0 : index
    %10 = vector.load %arg7[%c0_6, %c0_7] : memref<128x4xf32, #tpu.memory_space<vmem>>, vector<128x4xf32>
    %cst_8 = arith.constant dense<0.000000e+00> : vector<4x4xf32>
    %11 = tpu.matmul %9, %10, %cst_8 {dimension_numbers = #tpu.dot_dimension_numbers<[1], [0], [0], [1], [0, 0, 1, 1], [], []>} : vector<4x128xf32>, vector<128x4xf32>, vector<4x4xf32> -> vector<4x4xf32>
    %c0_9 = arith.constant 0 : index
    %c0_10 = arith.constant 0 : index
    %12 = vector.load %arg8[%c0_9, %c0_10] : memref<4x128xf32, #tpu.memory_space<vmem>>, vector<4x128xf32>
    %cst_11 = arith.constant dense<0.000000e+00> : vector<4x128xf32>
    %13 = tpu.matmul %11, %12, %cst_11 {dimension_numbers = #tpu.dot_dimension_numbers<[1], [0], [0], [1], [0, 0, 1, 1], [], []>} : vector<4x4xf32>, vector<4x128xf32>, vector<4x128xf32> -> vector<4x128xf32>
    %14 = vector.extract_strided_slice %13 {offsets = [0, 0], sizes = [2, 128], strides = [1, 1]} : vector<4x128xf32> to vector<2x128xf32>
    %15 = vector.shape_cast %14 : vector<2x128xf32> to vector<2x1x128xf32>
    %16 = vector.extract_strided_slice %13 {offsets = [2, 0], sizes = [2, 128], strides = [1, 1]} : vector<4x128xf32> to vector<2x128xf32>
    %17 = vector.shape_cast %16 : vector<2x128xf32> to vector<2x1x128xf32>
    %18 = arith.mulf %15, %15 : vector<2x1x128xf32>
    %19 = arith.subf %17, %18 : vector<2x1x128xf32>
    %cst_12 = arith.constant 0.000000e+00 : f32
    %20 = vector.broadcast %cst_12 : f32 to vector<2x1x128xf32>
    %21 = arith.maximumf %19, %20 : vector<2x1x128xf32>
    %22 = vector.broadcast %15 : vector<2x1x128xf32> to vector<2x16x128xf32>
    %23 = arith.subf %5, %22 : vector<2x16x128xf32>
    %cst_13 = arith.constant 9.99999974E-6 : f32
    %24 = vector.broadcast %cst_13 : f32 to vector<2x1x128xf32>
    %25 = arith.addf %21, %24 : vector<2x1x128xf32>
    %26 = math.rsqrt %25 : vector<2x1x128xf32>
    %27 = vector.broadcast %26 : vector<2x1x128xf32> to vector<2x16x128xf32>
    %28 = arith.mulf %23, %27 : vector<2x16x128xf32>
    %29 = vector.shape_cast %28 : vector<2x16x128xf32> to vector<32x128xf32>
    %cst_14 = arith.constant 0.000000e+00 : f32
    %30 = vector.broadcast %cst_14 : f32 to vector<32x128xf32>
    %31 = arith.maximumf %29, %30 : vector<32x128xf32>
    %32 = tpu.iota {dimensions = array<i32: 1>} : vector<2x16x1xi32>
    %c0_i32 = arith.constant 0 : i32
    %33 = vector.broadcast %c0_i32 : i32 to vector<2x16x1xi32>
    %34 = arith.cmpi sgt, %32, %33 : vector<2x16x1xi32>
    %c1_i32 = arith.constant 1 : i32
    %35 = tpu.dynamic_rotate %31 by %c1_i32 dim 0 : vector<32x128xf32>, i32 -> vector<32x128xf32>
    %36 = vector.shape_cast %35 : vector<32x128xf32> to vector<2x16x128xf32>
    %cst_15 = arith.constant 0.000000e+00 : f32
    %37 = vector.shape_cast %34 : vector<2x16x1xi1> to vector<2x16x1xi1>
    %38 = vector.broadcast %37 : vector<2x16x1xi1> to vector<2x16x128xi1>
    %39 = vector.broadcast %cst_15 : f32 to vector<2x16x128xf32>
    %40 = arith.select %38, %36, %39 : vector<2x16x128xi1>, vector<2x16x128xf32>
    %41 = vector.shape_cast %40 : vector<2x16x128xf32> to vector<32x128xf32>
    %c15_i32 = arith.constant 15 : i32
    %42 = vector.broadcast %c15_i32 : i32 to vector<2x16x1xi32>
    %43 = arith.cmpi slt, %32, %42 : vector<2x16x1xi32>
    %c31_i32 = arith.constant 31 : i32
    %44 = tpu.dynamic_rotate %31 by %c31_i32 dim 0 : vector<32x128xf32>, i32 -> vector<32x128xf32>
    %45 = vector.shape_cast %44 : vector<32x128xf32> to vector<2x16x128xf32>
    %cst_16 = arith.constant 0.000000e+00 : f32
    %46 = vector.shape_cast %43 : vector<2x16x1xi1> to vector<2x16x1xi1>
    %47 = vector.broadcast %46 : vector<2x16x1xi1> to vector<2x16x128xi1>
    %48 = vector.broadcast %cst_16 : f32 to vector<2x16x128xf32>
    %49 = arith.select %47, %45, %48 : vector<2x16x128xi1>, vector<2x16x128xf32>
    %50 = vector.shape_cast %49 : vector<2x16x128xf32> to vector<32x128xf32>
    %51 = arith.truncf %41 : vector<32x128xf32> to vector<32x128xbf16>
    %c0_17 = arith.constant 0 : index
    %c0_18 = arith.constant 0 : index
    %52 = vector.load %arg3[%c0_17, %c0_18] : memref<128x128xbf16, #tpu.memory_space<vmem>>, vector<128x128xbf16>
    %cst_19 = arith.constant dense<0.000000e+00> : vector<32x128xf32>
    %53 = tpu.matmul %51, %52, %cst_19 {dimension_numbers = #tpu.dot_dimension_numbers<[1], [0], [0], [1], [0, 0, 1, 1], [], []>} : vector<32x128xbf16>, vector<128x128xbf16>, vector<32x128xf32> -> vector<32x128xf32>
    %54 = arith.truncf %31 : vector<32x128xf32> to vector<32x128xbf16>
    %c0_20 = arith.constant 0 : index
    %c0_21 = arith.constant 0 : index
    %55 = vector.load %arg4[%c0_20, %c0_21] : memref<128x128xbf16, #tpu.memory_space<vmem>>, vector<128x128xbf16>
    %cst_22 = arith.constant dense<0.000000e+00> : vector<32x128xf32>
    %56 = tpu.matmul %54, %55, %cst_22 {dimension_numbers = #tpu.dot_dimension_numbers<[1], [0], [0], [1], [0, 0, 1, 1], [], []>} : vector<32x128xbf16>, vector<128x128xbf16>, vector<32x128xf32> -> vector<32x128xf32>
    %57 = arith.addf %53, %56 : vector<32x128xf32>
    %58 = arith.truncf %50 : vector<32x128xf32> to vector<32x128xbf16>
    %c0_23 = arith.constant 0 : index
    %c0_24 = arith.constant 0 : index
    %59 = vector.load %arg5[%c0_23, %c0_24] : memref<128x128xbf16, #tpu.memory_space<vmem>>, vector<128x128xbf16>
    %cst_25 = arith.constant dense<0.000000e+00> : vector<32x128xf32>
    %60 = tpu.matmul %58, %59, %cst_25 {dimension_numbers = #tpu.dot_dimension_numbers<[1], [0], [0], [1], [0, 0, 1, 1], [], []>} : vector<32x128xbf16>, vector<128x128xbf16>, vector<32x128xf32> -> vector<32x128xf32>
    %61 = arith.addf %57, %60 : vector<32x128xf32>
    %62 = vector.shape_cast %61 : vector<32x128xf32> to vector<2x16x128xf32>
    %cst_26 = arith.constant dense<0.000000e+00> : vector<2x128xf32>
    %63 = vector.multi_reduction <add>, %62, %cst_26 [1] : vector<2x16x128xf32> to vector<2x128xf32>
    %64 = arith.mulf %62, %62 : vector<2x16x128xf32>
    %cst_27 = arith.constant dense<0.000000e+00> : vector<2x128xf32>
    %65 = vector.multi_reduction <add>, %64, %cst_27 [1] : vector<2x16x128xf32> to vector<2x128xf32>
    %66 = tpu.concatenate %63, %65 in 0 : vector<2x128xf32>, vector<2x128xf32> -> vector<4x128xf32>
    %c0_28 = arith.constant 0 : index
    %c0_29 = arith.constant 0 : index
    %67 = vector.load %arg7[%c0_28, %c0_29] : memref<128x4xf32, #tpu.memory_space<vmem>>, vector<128x4xf32>
    %cst_30 = arith.constant dense<0.000000e+00> : vector<4x4xf32>
    %68 = tpu.matmul %66, %67, %cst_30 {dimension_numbers = #tpu.dot_dimension_numbers<[1], [0], [0], [1], [0, 0, 1, 1], [], []>} : vector<4x128xf32>, vector<128x4xf32>, vector<4x4xf32> -> vector<4x4xf32>
    %c0_31 = arith.constant 0 : index
    %c0_32 = arith.constant 0 : index
    %69 = vector.load %arg8[%c0_31, %c0_32] : memref<4x128xf32, #tpu.memory_space<vmem>>, vector<4x128xf32>
    %cst_33 = arith.constant dense<0.000000e+00> : vector<4x128xf32>
    %70 = tpu.matmul %68, %69, %cst_33 {dimension_numbers = #tpu.dot_dimension_numbers<[1], [0], [0], [1], [0, 0, 1, 1], [], []>} : vector<4x4xf32>, vector<4x128xf32>, vector<4x128xf32> -> vector<4x128xf32>
    %71 = vector.extract_strided_slice %70 {offsets = [0, 0], sizes = [2, 128], strides = [1, 1]} : vector<4x128xf32> to vector<2x128xf32>
    %72 = vector.shape_cast %71 : vector<2x128xf32> to vector<2x1x128xf32>
    %73 = vector.extract_strided_slice %70 {offsets = [2, 0], sizes = [2, 128], strides = [1, 1]} : vector<4x128xf32> to vector<2x128xf32>
    %74 = vector.shape_cast %73 : vector<2x128xf32> to vector<2x1x128xf32>
    %75 = arith.mulf %72, %72 : vector<2x1x128xf32>
    %76 = arith.subf %74, %75 : vector<2x1x128xf32>
    %cst_34 = arith.constant 0.000000e+00 : f32
    %77 = vector.broadcast %cst_34 : f32 to vector<2x1x128xf32>
    %78 = arith.maximumf %76, %77 : vector<2x1x128xf32>
    %79 = vector.broadcast %72 : vector<2x1x128xf32> to vector<2x16x128xf32>
    %80 = arith.subf %62, %79 : vector<2x16x128xf32>
    %cst_35 = arith.constant 9.99999974E-6 : f32
    %81 = vector.broadcast %cst_35 : f32 to vector<2x1x128xf32>
    %82 = arith.addf %78, %81 : vector<2x1x128xf32>
    %83 = math.rsqrt %82 : vector<2x1x128xf32>
    %84 = vector.broadcast %83 : vector<2x1x128xf32> to vector<2x16x128xf32>
    %85 = arith.mulf %80, %84 : vector<2x16x128xf32>
    %86 = vector.shape_cast %85 : vector<2x16x128xf32> to vector<32x128xf32>
    %cst_36 = arith.constant 0.000000e+00 : f32
    %87 = vector.broadcast %cst_36 : f32 to vector<32x128xf32>
    %88 = arith.maximumf %86, %87 : vector<32x128xf32>
    %89 = arith.truncf %88 : vector<32x128xf32> to vector<32x128xbf16>
    %c0_37 = arith.constant 0 : index
    %c0_38 = arith.constant 0 : index
    %90 = vector.load %arg6[%c0_37, %c0_38] : memref<128x256xbf16, #tpu.memory_space<vmem>>, vector<128x256xbf16>
    %cst_39 = arith.constant dense<0.000000e+00> : vector<32x256xf32>
    %91 = tpu.matmul %89, %90, %cst_39 {dimension_numbers = #tpu.dot_dimension_numbers<[1], [0], [0], [1], [0, 0, 1, 1], [], []>} : vector<32x128xbf16>, vector<128x256xbf16>, vector<32x256xf32> -> vector<32x256xf32>
    %92 = vector.shape_cast %91 : vector<32x256xf32> to vector<2x16x256xf32>
    %cst_40 = arith.constant dense<0.000000e+00> : vector<2x256xf32>
    %93 = vector.multi_reduction <add>, %92, %cst_40 [1] : vector<2x16x256xf32> to vector<2x256xf32>
    %94 = arith.mulf %92, %92 : vector<2x16x256xf32>
    %cst_41 = arith.constant dense<0.000000e+00> : vector<2x256xf32>
    %95 = vector.multi_reduction <add>, %94, %cst_41 [1] : vector<2x16x256xf32> to vector<2x256xf32>
    %96 = tpu.concatenate %93, %95 in 0 : vector<2x256xf32>, vector<2x256xf32> -> vector<4x256xf32>
    %c0_42 = arith.constant 0 : index
    %c0_43 = arith.constant 0 : index
    %97 = vector.load %arg9[%c0_42, %c0_43] : memref<256x4xf32, #tpu.memory_space<vmem>>, vector<256x4xf32>
    %cst_44 = arith.constant dense<0.000000e+00> : vector<4x4xf32>
    %98 = tpu.matmul %96, %97, %cst_44 {dimension_numbers = #tpu.dot_dimension_numbers<[1], [0], [0], [1], [0, 0, 1, 1], [], []>} : vector<4x256xf32>, vector<256x4xf32>, vector<4x4xf32> -> vector<4x4xf32>
    %c0_45 = arith.constant 0 : index
    %c0_46 = arith.constant 0 : index
    %99 = vector.load %arg10[%c0_45, %c0_46] : memref<4x256xf32, #tpu.memory_space<vmem>>, vector<4x256xf32>
    %cst_47 = arith.constant dense<0.000000e+00> : vector<4x256xf32>
    %100 = tpu.matmul %98, %99, %cst_47 {dimension_numbers = #tpu.dot_dimension_numbers<[1], [0], [0], [1], [0, 0, 1, 1], [], []>} : vector<4x4xf32>, vector<4x256xf32>, vector<4x256xf32> -> vector<4x256xf32>
    %101 = vector.extract_strided_slice %100 {offsets = [0, 0], sizes = [2, 256], strides = [1, 1]} : vector<4x256xf32> to vector<2x256xf32>
    %102 = vector.shape_cast %101 : vector<2x256xf32> to vector<2x1x256xf32>
    %103 = vector.extract_strided_slice %100 {offsets = [2, 0], sizes = [2, 256], strides = [1, 1]} : vector<4x256xf32> to vector<2x256xf32>
    %104 = vector.shape_cast %103 : vector<2x256xf32> to vector<2x1x256xf32>
    %105 = arith.mulf %102, %102 : vector<2x1x256xf32>
    %106 = arith.subf %104, %105 : vector<2x1x256xf32>
    %cst_48 = arith.constant 0.000000e+00 : f32
    %107 = vector.broadcast %cst_48 : f32 to vector<2x1x256xf32>
    %108 = arith.maximumf %106, %107 : vector<2x1x256xf32>
    %109 = vector.broadcast %102 : vector<2x1x256xf32> to vector<2x16x256xf32>
    %110 = arith.subf %92, %109 : vector<2x16x256xf32>
    %cst_49 = arith.constant 9.99999974E-6 : f32
    %111 = vector.broadcast %cst_49 : f32 to vector<2x1x256xf32>
    %112 = arith.addf %108, %111 : vector<2x1x256xf32>
    %113 = math.rsqrt %112 : vector<2x1x256xf32>
    %114 = vector.broadcast %113 : vector<2x1x256xf32> to vector<2x16x256xf32>
    %115 = arith.mulf %110, %114 : vector<2x16x256xf32>
    %116 = vector.shape_cast %115 : vector<2x16x256xf32> to vector<32x256xf32>
    %117 = arith.addf %116, %1 : vector<32x256xf32>
    %cst_50 = arith.constant 0.000000e+00 : f32
    %118 = vector.broadcast %cst_50 : f32 to vector<32x256xf32>
    %119 = arith.maximumf %117, %118 : vector<32x256xf32>
    %120 = vector.shape_cast %119 : vector<32x256xf32> to vector<2x16x256xf32>
    %c0_51 = arith.constant 0 : index
    %c0_52 = arith.constant 0 : index
    %c0_53 = arith.constant 0 : index
    %121 = vector.load %arg11[%c0_51, %c0_52, %c0_53] : memref<2x16x256xf32, #tpu.memory_space<vmem>>, vector<2x16x256xf32>
    tpu.vector_store %arg11[%c0_51, %c0_52, %c0_53], %120 {strides = array<i32>} : memref<2x16x256xf32, #tpu.memory_space<vmem>>, vector<2x16x256xf32>,
    return
  }
  func.func @transform_0(%arg0: i32) -> (i32, i32, i32) {
    %c0_i32 = arith.constant 0 : i32
    %c0_i32_0 = arith.constant 0 : i32
    %c0_i32_1 = arith.constant 0 : i32
    return %arg0, %c0_i32, %c0_i32_0 : i32, i32, i32
  }
  func.func @transform_1(%arg0: i32) -> (i32, i32) {
    %c0_i32 = arith.constant 0 : i32
    %c0_i32_0 = arith.constant 0 : i32
    %c0_i32_1 = arith.constant 0 : i32
    return %c0_i32, %c0_i32_0 : i32, i32
  }
  func.func @transform_2(%arg0: i32) -> (i32, i32) {
    %c0_i32 = arith.constant 0 : i32
    %c0_i32_0 = arith.constant 0 : i32
    %c0_i32_1 = arith.constant 0 : i32
    return %c0_i32, %c0_i32_0 : i32, i32
  }
  func.func @transform_3(%arg0: i32) -> (i32, i32) {
    %c0_i32 = arith.constant 0 : i32
    %c0_i32_0 = arith.constant 0 : i32
    %c0_i32_1 = arith.constant 0 : i32
    return %c0_i32, %c0_i32_0 : i32, i32
  }
  func.func @transform_4(%arg0: i32) -> (i32, i32) {
    %c0_i32 = arith.constant 0 : i32
    %c0_i32_0 = arith.constant 0 : i32
    %c0_i32_1 = arith.constant 0 : i32
    return %c0_i32, %c0_i32_0 : i32, i32
  }
  func.func @transform_5(%arg0: i32) -> (i32, i32) {
    %c0_i32 = arith.constant 0 : i32
    %c0_i32_0 = arith.constant 0 : i32
    %c0_i32_1 = arith.constant 0 : i32
    return %c0_i32, %c0_i32_0 : i32, i32
  }
  func.func @transform_6(%arg0: i32) -> (i32, i32) {
    %c0_i32 = arith.constant 0 : i32
    %c0_i32_0 = arith.constant 0 : i32
    %c0_i32_1 = arith.constant 0 : i32
    return %c0_i32, %c0_i32_0 : i32, i32
  }
  func.func @transform_7(%arg0: i32) -> (i32, i32) {
    %c0_i32 = arith.constant 0 : i32
    %c0_i32_0 = arith.constant 0 : i32
    %c0_i32_1 = arith.constant 0 : i32
    return %c0_i32, %c0_i32_0 : i32, i32
  }
  func.func @transform_8(%arg0: i32) -> (i32, i32) {
    %c0_i32 = arith.constant 0 : i32
    %c0_i32_0 = arith.constant 0 : i32
    %c0_i32_1 = arith.constant 0 : i32
    return %c0_i32, %c0_i32_0 : i32, i32
  }
  func.func @transform_9(%arg0: i32) -> (i32, i32) {
    %c0_i32 = arith.constant 0 : i32
    %c0_i32_0 = arith.constant 0 : i32
    %c0_i32_1 = arith.constant 0 : i32
    return %c0_i32, %c0_i32_0 : i32, i32
  }
  func.func @transform_10(%arg0: i32) -> (i32, i32, i32) {
    %c0_i32 = arith.constant 0 : i32
    %c0_i32_0 = arith.constant 0 : i32
    %c0_i32_1 = arith.constant 0 : i32
    return %arg0, %c0_i32, %c0_i32_0 : i32, i32, i32
  }
}

</mosaic_0001>

<bundles_post_ra>
// kernel: tpu_custom_call.1
= control target key start
LH: loop header
LB: loop body
LE: loop exit
PB: predicated region body
PF: predicated region fallthrough
CT: control target
= control target key end

     0   :  { %15 = vsyncpa [#allocation3], 0  ;;  %s3027_s0 = inlined_call_operand.vmem [shape: f32[2,16,256], index: 0, kind: input, shape index: {}]   ;;  %s3028_s1 = inlined_call_operand.vmem [shape: bf16[256,128], index: 1, kind: input, shape index: {}]   ;;  %s3029_s2 = inlined_call_operand.vmem [shape: bf16[128,128], index: 2, kind: input, shape index: {}]   ;;  %s3030_s3 = inlined_call_operand.hbm [shape: bf16[128,128], index: 3, kind: input, shape index: {}]   ;;  %s3031_s4 = inlined_call_operand.hbm [shape: bf16[128,128], index: 4, kind: input, shape index: {}]   ;;  %s3032_s5 = inlined_call_operand.vmem [shape: bf16[128,256], index: 5, kind: input, shape index: {}]   ;;  %s3033_s6 = inlined_call_operand.vmem [shape: f32[128,4], index: 6, kind: input, shape index: {}]   ;;  %s3034_s7 = inlined_call_operand.vmem [shape: f32[4,128], index: 7, kind: input, shape index: {}]   ;;  %s3035_s8 = inlined_call_operand.vmem [shape: f32[256,4], index: 8, kind: input, shape index: {}]   ;;  %s3036_s9 = inlined_call_operand.vmem [shape: f32[4,256], index: 9, kind: input, shape index: {}]   ;;  %s3037_s10 = inlined_call_operand.hbm [shape: f32[2,16,256], index: 10, kind: output, shape index: {}]  }
   0x1   :  { %16 = vsyncpa [#allocation6], 0 }
   0x2   :  { %17 = vsyncpa [#allocation4], 0  ;;  %s2344_s13 = smov [#allocation2]   ;;  %s2272_s17 = scalar_lea.hbm %s3030_s3, 1024 }
   0x3   :  { %s29_s14 = sshll.u32 %s2344_s13, 4  ;;  %p2273_p0 = scmp.ne.s32.totalorder %s3030_s3, %s2272_s17  ;;  %s30_s14 = int_to_ptr.vmem [resolvable:$true] %s29_s14 }
   0x4   :  { %p2276_p1 = scmp.lt.u32.totalorder %s2272_s17, %s3030_s3 }
   0x6   :  { %p2278_p2 = pnand %p2276_p1, %p2273_p0 }
   0x8   :  { %2281 = shalt.err (!%p2278_p2)
}
   0x9   :  { %s2282_s22 = scalar_lea.vmem %s30_s14, 1024  ;;  %p2287_p4 = scmp.lt.s32.totalorder %s30_s14, %s30_s14 }
   0xa   :  { %p2283_p3 = scmp.ne.s32.totalorder %s30_s14, %s2282_s22  ;;  %p2288_p5 = scmp.lt.s32.totalorder %s2282_s22, %s2282_s22 }
   0xc   :  { %p2289_p6 = por %p2288_p5, %p2287_p4 }
   0xe   :  { %p2290_p7 = pnand %p2289_p6, %p2283_p3 }
  0x10   :  { %2293 = shalt.err (!%p2290_p7)
}
  0x11   :  { %s2345_s23 = smov 64   ;;  %s2346_s24 = smov 4  }
  0x12   :  { %35 = dma.hbm_to_vmem [thread:$0]  %s3030_s3, 1024, %s30_s14, [#allocation3], %s2345_s23, %s2345_s23, %s2346_s24  }
  0x13   :  { %s2347_s27 = smov [#allocation5]   ;;  %s2294_s11 = scalar_lea.hbm %s3031_s4, 1024 }
  0x14   :  { %s41_s28 = sshll.u32 %s2347_s27, 4  ;;  %p2295_p8 = scmp.ne.s32.totalorder %s3031_s4, %s2294_s11  ;;  %s42_s28 = int_to_ptr.vmem [resolvable:$true] %s41_s28 }
  0x15   :  { %p2298_p9 = scmp.lt.u32.totalorder %s2294_s11, %s3031_s4 }
  0x17   :  { %p2300_p10 = pnand %p2298_p9, %p2295_p8 }
  0x19   :  { %2303 = shalt.err (!%p2300_p10)
}
  0x1a   :  { %s2304_s17 = scalar_lea.vmem %s42_s28, 1024  ;;  %p2309_p12 = scmp.lt.s32.totalorder %s42_s28, %s42_s28 }
  0x1b   :  { %p2305_p11 = scmp.ne.s32.totalorder %s42_s28, %s2304_s17  ;;  %p2310_p13 = scmp.lt.s32.totalorder %s2304_s17, %s2304_s17 }
  0x1d   :  { %p2311_p0 = por %p2310_p13, %p2309_p12 }
  0x1f   :  { %p2312_p1 = pnand %p2311_p0, %p2305_p11 }
  0x21   :  { %2315 = shalt.err (!%p2312_p1)
}
  0x22   :  { %47 = dma.hbm_to_vmem [thread:$0]  %s3031_s4, 1024, %s42_s28, [#allocation6], %s2345_s23, %s2345_s23, %s2346_s24  }
  0x23   :  { %2338 = dma.done.wait [#allocation3], 1024  }
  0x24   :  { %2339 = vsyncadd [#allocation3], 4294966272 }
  0x25   :  { %2340 = dma.done.wait [#allocation6], 1024  }
  0x26   :  { %2341 = vsyncadd [#allocation6], 4294966272  ;;  %v2187_v0 = vld [vmem:[%s3028_s1 + $0x40] sm:$0xff]   ;;  %v2189_v2 = vld [vmem:[%s3028_s1 + $0x48] sm:$0xff]   ;;  %v2348_v31 = vmov 0.0|0.0   ;;  %vm2349_vm0 = vmmov 0  }
  0x27   :  { %v2188_v1 = vld [vmem:[%s3028_s1] sm:$0xff]   ;;  %1815 = vmatprep.subr.bf16.mxu0 %v2187_v0  ;;  %v2190_v3 = vld [vmem:[%s3028_s1 + $0x8] sm:$0xff]   ;;  %v2191_v4 = vld [vmem:[%s3028_s1 + $0x50] sm:$0xff]   ;;  %2086 = vmatprep.subr.bf16.mxu1 %v2348_v31  ;;  %v2350_v52 = vmov 0.0   ;;  %vm288_vm1 = vcmask 1041409   ;;  %vm293_vm2 = vcmask 1043459  }
  0x28   :  { %1816 = vmatpush3.bf16.msra.mxu0 %v2188_v1  ;;  %v2192_v5 = vld [vmem:[%s3028_s1 + $0x10] sm:$0xff]   ;;  %v2193_v6 = vld [vmem:[%s3028_s1 + $0x58] sm:$0xff]   ;;  %v2195_v8 = vld [vmem:[%s3028_s1 + $0x60] sm:$0xff]   ;;  %1978 = vmatprep.mubr.msk.f32.mxu1 %vm2349_vm0, %v2350_v52  ;;  %vm296_vm3 = vcmask 1041408   ;;  %vm389_vm4 = vcmask 1043456   ;;  %vm385_vm5 = vcmask 31744  }
  0x29   :  { %1817 = vmatprep.subr.bf16.mxu0 %v2189_v2  ;;  %v2194_v7 = vld [vmem:[%s3028_s1 + $0x18] sm:$0xff]   ;;  %v2196_v9 = vld [vmem:[%s3028_s1 + $0x20] sm:$0xff]   ;;  %v2197_v10 = vld [vmem:[%s3028_s1 + $0x68] sm:$0xff]   ;;  %vm2352_vm8 = vmmov 1   ;;  %s2354_s20 = smov [#allocation7]  }
  0x2a   :  { %v66_v11 = vld [vmem:[%s3027_s0 + $0x8] sm:$0xff]  ;;  %v68_v12 = vld [vmem:[%s3027_s0 + $0x18] sm:$0xff]  ;;  %v2199_v15 = vld [vmem:[%s3028_s1 + $0x70] sm:$0xff]   ;;  %s1727_s21 = sshll.u32 %s2354_s20, 4  ;;  %s1728_s21 = int_to_ptr.vmem [resolvable:$true] %s1727_s21 }
  0x2b   :  { %v74_v13 = vpack.c.bf16 %v68_v12, %v66_v11  ;;  %v2198_v14 = vld [vmem:[%s3028_s1 + $0x28] sm:$0xff]   ;;  %v2200_v16 = vld [vmem:[%s3028_s1 + $0x30] sm:$0xff]   ;;  %v2201_v17 = vld [vmem:[%s3028_s1 + $0x78] sm:$0xff]   ;;  %s2316_s28 = scalar_lea.vmem %s1728_s21, 1024  ;;  %p2321_p3 = scmp.lt.s32.totalorder %s1728_s21, %s1728_s21 }
  0x2c   :  { %1818 = vmatpush3.bf16.msra.mxu0 %v2190_v3  ;;  %v2202_v18 = vld [vmem:[%s3028_s1 + $0x38] sm:$0xff]   ;;  %v65_v19 = vld [vmem:[%s3027_s0] sm:$0xff]  ;;  %v67_v20 = vld [vmem:[%s3027_s0 + $0x10] sm:$0xff]  ;;  %p2317_p2 = scmp.ne.s32.totalorder %s1728_s21, %s2316_s28  ;;  %p2322_p4 = scmp.lt.s32.totalorder %s2316_s28, %s2316_s28 }
  0x2d   :  { %1819 = vmatprep.subr.bf16.mxu0 %v2191_v4  ;;  %237 = vmatprep.mubr.bf16.mxu0 %v74_v13  ;;  %v70_v21 = vld [vmem:[%s3027_s0 + $0x28] sm:$0xff]  ;;  %v72_v22 = vld [vmem:[%s3027_s0 + $0x38] sm:$0xff]  ;;  %v73_v23 = vpack.c.bf16 %v67_v20, %v65_v19  ;;  %v69_v25 = vld [vmem:[%s3027_s0 + $0x20] sm:$0xff] }
  0x2e   :  { %v76_v24 = vpack.c.bf16 %v72_v22, %v70_v21  ;;  %v71_v26 = vld [vmem:[%s3027_s0 + $0x30] sm:$0xff]  ;;  %v298_v28 = vld [vmem:[%s3033_s6] sm:$0xff]  ;;  %v299_v29 = vld [vmem:[%s3033_s6 + $0x8] sm:$0xff]  ;;  %p2323_p5 = por %p2322_p4, %p2321_p3 }
  0x2f   :  { %v75_v27 = vpack.c.bf16 %v71_v26, %v69_v25  ;;  %v2514_v30 = vpack.c.bf16 %v299_v29, %v298_v28  ;;  %v300_v32 = vld [vmem:[%s3033_s6 + $0x10] sm:$0xff]  ;;  %v301_v33 = vld [vmem:[%s3033_s6 + $0x18] sm:$0xff]  ;;  %v302_v35 = vld [vmem:[%s3033_s6 + $0x20] sm:$0xff] }
  0x30   :  { %1820 = vmatpush3.bf16.msra.mxu0 %v2192_v5  ;;  %v2525_v34 = vpack.c.bf16 %v301_v33, %v300_v32  ;;  %v303_v36 = vld [vmem:[%s3033_s6 + $0x28] sm:$0xff]  ;;  %v304_v38 = vld [vmem:[%s3033_s6 + $0x30] sm:$0xff]  ;;  %v305_v39 = vld [vmem:[%s3033_s6 + $0x38] sm:$0xff]  ;;  %p2324_p6 = pnand %p2323_p5, %p2317_p2 }
  0x31   :  { %1821 = vmatprep.subr.bf16.mxu0 %v2193_v6  ;;  %2088 = vmatpush3.bf16.msra.mxu1 %v2514_v30  ;;  %v2535_v37 = vpack.c.bf16 %v303_v36, %v302_v35  ;;  %v2545_v40 = vpack.c.bf16 %v305_v39, %v304_v38  ;;  %v306_v41 = vld [vmem:[%s3033_s6 + $0x40] sm:$0xff]  ;;  %v307_v42 = vld [vmem:[%s3033_s6 + $0x48] sm:$0xff]  ;;  %v308_v44 = vld [vmem:[%s3033_s6 + $0x50] sm:$0xff] }
  0x32   :  { %2089 = vmatprep.subr.bf16.mxu1 %v2348_v31  ;;  %v2555_v43 = vpack.c.bf16 %v307_v42, %v306_v41  ;;  %v309_v45 = vld [vmem:[%s3033_s6 + $0x58] sm:$0xff]  ;;  %v310_v47 = vld [vmem:[%s3033_s6 + $0x60] sm:$0xff]  ;;  %v311_v48 = vld [vmem:[%s3033_s6 + $0x68] sm:$0xff] }
  0x33   :  { %v2565_v46 = vpack.c.bf16 %v309_v45, %v308_v44  ;;  %v312_v49 = vld [vmem:[%s3033_s6 + $0x70] sm:$0xff]  ;;  %v2578_v50 = vpack.c.bf16 %v311_v48, %v310_v47  ;;  %v313_v51 = vld [vmem:[%s3033_s6 + $0x78] sm:$0xff]  ;;  %v2616_v41 = vld [vmem:[%s3034_s7] sm:$0xf] }
  0x34   :  { %1822 = vmatpush3.bf16.msra.mxu0 %v2194_v7  ;;  %v2586_v53 = vpack.c.bf16 %v313_v51, %v312_v49  ;;  %v2210_v47 = vld [vmem:[#allocation2 + $0x38] sm:$0xff]   ;;  %v2211_v48 = vld [vmem:[%s3029_s2] sm:$0xff]   ;;  %v2351_v49 = vmov 1966171168   ;;  %v467_v51 = vlaneseq }
  0x35   :  { %1823 = vmatprep.subr.bf16.mxu0 %v2195_v8  ;;  %2091 = vmatpush3.bf16.msra.mxu1 %v2525_v34 }
  0x36   :  { %2092 = vmatprep.subr.bf16.mxu1 %v2348_v31 }
  0x38   :  { %1824 = vmatpush3.bf16.msra.mxu0 %v2196_v9 }
  0x39   :  { %1825 = vmatprep.subr.bf16.mxu0 %v2197_v10  ;;  %2094 = vmatpush3.bf16.msra.mxu1 %v2535_v37 }
  0x3a   :  { %2095 = vmatprep.subr.bf16.mxu1 %v2348_v31 }
  0x3c   :  { %1826 = vmatpush3.bf16.msra.mxu0 %v2198_v14 }
  0x3d   :  { %1827 = vmatprep.subr.bf16.mxu0 %v2199_v15  ;;  %2097 = vmatpush3.bf16.msra.mxu1 %v2545_v40 }
  0x3e   :  { %2098 = vmatprep.subr.bf16.mxu1 %v2348_v31 }
  0x40   :  { %1828 = vmatpush3.bf16.msra.mxu0 %v2200_v16 }
  0x41   :  { %1829 = vmatprep.subr.bf16.mxu0 %v2201_v17  ;;  %2100 = vmatpush3.bf16.msra.mxu1 %v2555_v43 }
  0x42   :  { %2101 = vmatprep.subr.bf16.mxu1 %v2348_v31 }
  0x44   :  { %1830 = vmatpush3.bf16.msra.mxu0 %v2202_v18 }
  0x45   :  { %2103 = vmatpush3.bf16.msra.mxu1 %v2565_v46 }
  0x46   :  { %2104 = vmatprep.subr.bf16.mxu1 %v2348_v31 }
  0x47   :  { %238 = vmatmul.mubr.bf16.vlgmr.msra.gmra.mrb[0].mxu0 %v73_v23 }
  0x48   :  { %245 = vmatprep.mubr.bf16.mxu0 %v76_v24 }
  0x49   :  { %2106 = vmatpush3.bf16.msra.mxu1 %v2578_v50 }
  0x4a   :  { %2107 = vmatprep.subr.bf16.mxu1 %v2348_v31 }
  0x4d   :  { %2109 = vmatpush3.bf16.msra.mxu1 %v2586_v53 }
  0x4e   :  { %1981 = vmatprep.subr.mxu1 %v2350_v52 }
  0x4f   :  { %246 = vmatmul.mubr.bf16.gmra.mrb[4].mxu0 %v75_v27 }
 0x11a   :  { %v1831_v54 = vpop.f32.mrb[0].mxu0 }
 0x11b   :  { %v1832_v55 = vpop.f32.mrb[1].mxu0 }
 0x11c   :  { %v2591_v56 = vadd.f32 %v1832_v55, %v1831_v54  ;;  %v1834_v57 = vpop.f32.mrb[2].mxu0  ;;  %v2646_v54 = vshrl.u32 %v467_v51, 7 }
 0x11d   :  { %v1835_v58 = vpop.f32.mrb[3].mxu0 }
 0x11e   :  { %v2593_v59 = vadd.f32 %v1835_v58, %v1834_v57  ;;  %v268_v60 = vmul.f32 %v2591_v56, %v2591_v56  ;;  %vm539_vm6 = vcmp.gt.s32.totalorder %v2646_v54, 0  ;;  %vm545_vm7 = vcmp.lt.s32.totalorder %v2646_v54, 1 }
 0x11f   :  { %vm2686_vm9 = vmpackc.low %vm2352_vm8, %vm539_vm6  ;;  %vm564_vm11 = vcmp.lt.s32.totalorder %v2646_v54, 7 }
 0x120   :  { %v254_v61 = vadd.f32 %v2593_v59, %v2591_v56  ;;  %v269_v62 = vmul.f32 %v2593_v59, %v2593_v59 }
 0x122   :  { %v255_v63 = vrot.slane %v254_v61, 4  ;;  %v272_v0 = vadd.f32 %v269_v62, %v268_v60  ;;  %v1837_v1 = vpop.f32.mrb[4].mxu0 }
 0x123   :  { %v1838_v2 = vpop.f32.mrb[5].mxu0 }
 0x124   :  { %v273_v3 = vrot.slane %v272_v0, 4  ;;  %v2601_v4 = vadd.f32 %v1838_v2, %v1837_v1  ;;  %v1840_v5 = vpop.f32.mrb[6].mxu0  ;;  %v256_v7 = vadd.f32 %v255_v63, %v254_v61 }
 0x125   :  { %v1841_v6 = vpop.f32.mrb[7].mxu0 }
 0x126   :  { %v274_v8 = vadd.f32 %v273_v3, %v272_v0  ;;  %v2603_v9 = vadd.f32 %v1841_v6, %v1840_v5  ;;  %v270_v10 = vmul.f32 %v2601_v4, %v2601_v4  ;;  %v257_v13 = vrot.slane %v256_v7, 2 }
 0x128   :  { %v261_v11 = vadd.f32 %v2603_v9, %v2601_v4  ;;  %v271_v12 = vmul.f32 %v2603_v9, %v2603_v9  ;;  %v275_v14 = vrot.slane %v274_v8, 2  ;;  %v258_v19 = vadd.f32 %v257_v13, %v256_v7 }
 0x12a   :  { %v262_v15 = vrot.slane %v261_v11, 4  ;;  %v279_v16 = vadd.f32 %v271_v12, %v270_v10  ;;  %v276_v22 = vadd.f32 %v275_v14, %v274_v8  ;;  %v259_v25 = vrot.slane %v258_v19, 1 }
 0x12b   :  { %v2655_v12 = vsub.s32 0, %v2646_v54 }
 0x12c   :  { %v263_v17 = vadd.f32 %v262_v15, %v261_v11  ;;  %v280_v18 = vrot.slane %v279_v16, 4  ;;  %v277_v27 = vrot.slane %v276_v22, 1  ;;  %v260_v33 = vadd.f32 %v259_v25, %v258_v19 }
 0x12e   :  { %v264_v20 = vrot.slane %v263_v17, 2  ;;  %v281_v21 = vadd.f32 %v280_v18, %v279_v16  ;;  %v278_v35 = vadd.f32 %v277_v27, %v276_v22 }
 0x130   :  { %v265_v23 = vadd.f32 %v264_v20, %v263_v17  ;;  %v282_v24 = vrot.slane %v281_v21, 2 }
 0x132   :  { %v266_v26 = vrot.slane %v265_v23, 1  ;;  %v283_v28 = vadd.f32 %v282_v24, %v281_v21 }
 0x134   :  { %v267_v29 = vadd.f32 %v266_v26, %v265_v23  ;;  %v284_v32 = vrot.slane %v283_v28, 1 }
 0x136   :  { %v285_v36 = vadd.f32 %v284_v32, %v283_v28  ;;  %v289_v38 = vsel %vm288_vm1, %v267_v29, %v260_v33  ;;  %v2212_v33 = vld [vmem:[%s3029_s2 + $0x8] sm:$0xff]  }
 0x138   :  { %v294_v39 = vsel %vm293_vm2, %v285_v36, %v278_v35 }
 0x139   :  { %v297_v42 = vsel %vm296_vm3, %v289_v38, %v294_v39 }
 0x13a   :  { %1979 = vmatmul.mubr.f32.vlgmr.msra.gmra.mrb[0].mxu1 %v297_v42 }
 0x13b   :  { %1982 = vmatpush3.msk.msra.mxu1 %vm389_vm4, %v2616_v41  ;;  %1983 = vmatprep.mubr.msk.f32.mxu1 %vm2349_vm0, %v2350_v52 }
 0x13c   :  { %2110 = vmatprep.subr.bf16.mxu1 %v2348_v31 }
 0x20d   :  { %v380_v44 = vpop.f32.mrb[0].mxu1 }
 0x20e   :  { %v1980_v45 = vpop.f32.mrb[1].mxu1  ;;  %1984 = vmatmul.mubr.msk.f32.vlgmr.msra.gmra.mrb[2].mxu1 %vm385_vm5, %v380_v44  ;;  %v2213_v44 = vld [vmem:[%s3029_s2 + $0x10] sm:$0xff]  }
 0x20f   :  { %2112 = vmatpush3.bf16.msra.mxu1 %v2514_v30  ;;  %2078 = vmatprep.mubr.msk.f32.mxu1 %vm2349_vm0, %v2350_v52  ;;  %v2203_v30 = vld [vmem:[#allocation2] sm:$0xff]   ;;  %v2214_v45 = vld [vmem:[%s3029_s2 + $0x18] sm:$0xff]  }
 0x210   :  { %2113 = vmatprep.subr.bf16.mxu1 %v2348_v31  ;;  %1986 = vmatprep.subr.bf16.mxu0 %v2203_v30 }
 0x211   :  { %1987 = vmatpush3.bf16.msra.mxu0 %v2203_v30  ;;  %v2215_v30 = vld [vmem:[%s3029_s2 + $0x20] sm:$0xff]  }
 0x213   :  { %2115 = vmatpush3.bf16.msra.mxu1 %v2525_v34  ;;  %v2204_v34 = vld [vmem:[#allocation2 + $0x8] sm:$0xff]  }
 0x214   :  { %2116 = vmatprep.subr.bf16.mxu1 %v2348_v31  ;;  %1988 = vmatprep.subr.bf16.mxu0 %v2204_v34 }
 0x215   :  { %1989 = vmatpush3.bf16.msra.mxu0 %v2204_v34  ;;  %v2216_v34 = vld [vmem:[%s3029_s2 + $0x28] sm:$0xff]  }
 0x217   :  { %2118 = vmatpush3.bf16.msra.mxu1 %v2535_v37  ;;  %v2205_v37 = vld [vmem:[#allocation2 + $0x10] sm:$0xff]  }
 0x218   :  { %2119 = vmatprep.subr.bf16.mxu1 %v2348_v31  ;;  %1990 = vmatprep.subr.bf16.mxu0 %v2205_v37 }
 0x219   :  { %1991 = vmatpush3.bf16.msra.mxu0 %v2205_v37  ;;  %v2217_v37 = vld [vmem:[%s3029_s2 + $0x30] sm:$0xff]  }
 0x21b   :  { %2121 = vmatpush3.bf16.msra.mxu1 %v2545_v40  ;;  %v2206_v40 = vld [vmem:[#allocation2 + $0x18] sm:$0xff]  }
 0x21c   :  { %2122 = vmatprep.subr.bf16.mxu1 %v2348_v31  ;;  %1992 = vmatprep.subr.bf16.mxu0 %v2206_v40 }
 0x21d   :  { %1993 = vmatpush3.bf16.msra.mxu0 %v2206_v40  ;;  %v2218_v40 = vld [vmem:[%s3029_s2 + $0x38] sm:$0xff]  }
 0x21f   :  { %2124 = vmatpush3.bf16.msra.mxu1 %v2555_v43  ;;  %v2207_v43 = vld [vmem:[#allocation2 + $0x20] sm:$0xff]  }
 0x220   :  { %2125 = vmatprep.subr.bf16.mxu1 %v2348_v31  ;;  %1994 = vmatprep.subr.bf16.mxu0 %v2207_v43 }
 0x221   :  { %1995 = vmatpush3.bf16.msra.mxu0 %v2207_v43 }
 0x223   :  { %2127 = vmatpush3.bf16.msra.mxu1 %v2565_v46  ;;  %v2209_v46 = vld [vmem:[#allocation2 + $0x30] sm:$0xff]  }
 0x224   :  { %2128 = vmatprep.subr.bf16.mxu1 %v2348_v31 }
 0x227   :  { %2130 = vmatpush3.bf16.msra.mxu1 %v2578_v50  ;;  %v465_v50 = vunpack.c.l.s4 %v2351_v49 }
 0x228   :  { %2131 = vmatprep.subr.bf16.mxu1 %v2348_v31  ;;  %v2208_v31 = vld [vmem:[#allocation2 + $0x28] sm:$0xff]  }
 0x229   :  { %1996 = vmatprep.subr.bf16.mxu0 %v2208_v31 }
 0x22a   :  { %1997 = vmatpush3.bf16.msra.mxu0 %v2208_v31  ;;  %v538_v31 = vadd.s32 8, %v2646_v54 }
 0x22b   :  { %2133 = vmatpush3.bf16.msra.mxu1 %v2586_v53  ;;  %1998 = vmatprep.subr.bf16.mxu0 %v2209_v46  ;;  %v466_v53 = vunpack.c.0.s8 %v465_v50 }
 0x22c   :  { %2081 = vmatprep.subr.mxu1 %v2350_v52  ;;  %vm559_vm10 = vcmp.lt.s32.totalorder %v538_v31, 15 }
 0x22d   :  { %v2649_v55 = vsub.s32 %v466_v53, %v2646_v54  ;;  %vm2724_vm12 = vmpackc.low %vm559_vm10, %vm2352_vm8 }
 0x22e   :  { %1999 = vmatpush3.bf16.msra.mxu0 %v2209_v46 }
 0x22f   :  { %2000 = vmatprep.subr.bf16.mxu0 %v2210_v47 }
 0x232   :  { %2001 = vmatpush3.bf16.msra.mxu0 %v2210_v47  ;;  %v2219_v47 = vld [vmem:[#allocation5] sm:$0xff]  }
 0x233   :  { %2006 = vmatprep.subr.bf16.mxu0 %v2211_v48 }
 0x2e1   :  { %v459_v57 = vpop.f32.mrb[2].mxu1 }
 0x2e2   :  { %v470_v58 = vrot.slane %v459_v57, %v2649_v55  ;;  %v1985_v60 = vpop.f32.mrb[3].mxu1 }
 0x2e3   :  { %v2236_v60 = vld [vmem:[%s3032_s5 + $0x30] ss:$8 sps:$4 sm:$0xff]  }
 0x2e4   :  { %v471_v61 = vcombine.high %v470_v58, %v470_v58  ;;  %v478_v62 = vrot.slane %v470_v58, %v2649_v55 }
 0x2e6   :  { %v485_v63 = vrot.slane %v471_v61, %v2649_v55  ;;  %v488_v0 = vcombine.high %v478_v62, %v478_v62  ;;  %v492_v1 = vmul.f32 %v478_v62, %v478_v62  ;;  %v501_v13 = vrot.slane %v478_v62, %v2655_v12  ;;  %v2220_v61 = vld [vmem:[#allocation5 + $0x8] sm:$0xff]  }
 0x2e8   :  { %v489_v2 = vcombine.high %v485_v63, %v485_v63  ;;  %v493_v3 = vmul.f32 %v485_v63, %v485_v63  ;;  %v494_v5 = vsub.f32 %v488_v0, %v492_v1  ;;  %v505_v14 = vrot.slane %v485_v63, %v2655_v12  ;;  %v2221_v63 = vld [vmem:[#allocation5 + $0x10] sm:$0xff]   ;;  %v2222_v0 = vld [vmem:[#allocation5 + $0x18] sm:$0xff]   ;;  %v2223_v1 = vld [vmem:[#allocation5 + $0x20] sm:$0xff]  }
 0x2e9   :  { %v508_v16 = vsub.f32 %v2591_v56, %v501_v13  ;;  %v509_v17 = vsub.f32 %v2593_v59, %v501_v13 }
 0x2ea   :  { %v495_v6 = vsub.f32 %v489_v2, %v493_v3  ;;  %v496_v7 = vmax.f32 %v494_v5, 0.0  ;;  %v510_v20 = vsub.f32 %v2601_v4, %v505_v14  ;;  %v511_v21 = vsub.f32 %v2603_v9, %v505_v14  ;;  %v2224_v2 = vld [vmem:[#allocation5 + $0x28] sm:$0xff]   ;;  %v2225_v3 = vld [vmem:[#allocation5 + $0x30] sm:$0xff]   ;;  %v2226_v5 = vld [vmem:[#allocation5 + $0x38] sm:$0xff]  }
 0x2ec   :  { %v497_v8 = vmax.f32 %v495_v6, 0.0  ;;  %v512_v10 = vadd.f32 1e-05, %v496_v7 }
 0x2ee   :  { %v513_v11 = vadd.f32 1e-05, %v497_v8  ;;  %2252 = vrsqrt.f32 %v512_v10 }
 0x2f0   :  { %2254 = vrsqrt.f32 %v513_v11 }
 0x2f8   :  { %v2253_v15 = vpop.eup %2252 }
 0x2f9   :  { %v521_v18 = vrot.slane %v2253_v15, %v2655_v12 }
 0x2fa   :  { %v2255_v19 = vpop.eup %2254 }
 0x2fb   :  { %v525_v22 = vrot.slane %v2255_v19, %v2655_v12  ;;  %v528_v23 = vmul.f32 %v521_v18, %v508_v16  ;;  %v529_v24 = vmul.f32 %v521_v18, %v509_v17 }
 0x2fd   :  { %v530_v25 = vmul.f32 %v525_v22, %v510_v20  ;;  %v531_v26 = vmul.f32 %v525_v22, %v511_v21  ;;  %v2665_v27 = vmax.f32 %v528_v23, 0.0  ;;  %v533_v28 = vmax.f32 %v529_v24, 0.0 }
 0x2ff   :  { %v2667_v29 = vmax.f32 %v530_v25, 0.0  ;;  %v2669_v56 = vmax.f32 %v531_v26, 0.0  ;;  %v595_v59 = vpack.c.bf16 %v533_v28, %v2665_v27  ;;  %v541_v32 = vrot.slane %v2665_v27, 7 }
 0x300   :  { %v542_v4 = vrot.slane %v533_v28, 7  ;;  %v561_v49 = vrot.slane %v533_v28, 1 }
 0x301   :  { %2002 = vmatprep.mubr.bf16.mxu0 %v595_v59  ;;  %v596_v9 = vpack.c.bf16 %v2669_v56, %v2667_v29  ;;  %v544_v35 = vrot.slane %v2669_v56, 7  ;;  %v543_v43 = vrot.slane %v2667_v29, 7  ;;  %v562_v46 = vrot.slane %v2667_v29, 1 }
 0x302   :  { %v548_v36 = vsel %vm545_vm7, %v541_v32, %v542_v4  ;;  %v563_v6 = vrot.slane %v2669_v56, 1 }
 0x303   :  { %2003 = vmatmul.mubr.bf16.vlgmr.msra.gmra.mrb[8].mxu0 %v596_v9  ;;  %v549_v38 = vsel %vm545_vm7, %v544_v35, %v541_v32  ;;  %v546_v50 = vsel %vm545_vm7, %v543_v43, %v544_v35  ;;  %v547_v51 = vsel %vm545_vm7, %v542_v4, %v543_v43  ;;  %v566_v53 = vsel %vm564_vm11, %v561_v49, %v562_v46 }
 0x304   :  { %2007 = vmatpush3.bf16.msra.mxu0 %v2211_v48  ;;  %v1775_v42 = vpack.c.bf16 %v548_v36, %v549_v38  ;;  %v560_v48 = vrot.slane %v2665_v27, 1  ;;  %v1778_v57 = vpack.c.bf16 %v546_v50, %v547_v51  ;;  %v565_v7 = vsel %vm564_vm11, %v562_v46, %v563_v6  ;;  %v2229_v50 = vld [vmem:[%s3032_s5 + $0x4] ss:$8 sps:$4 sm:$0xff]   ;;  %v2227_v51 = vld [vmem:[%s3032_s5] ss:$8 sps:$4 sm:$0xff]  }
 0x305   :  { %2008 = vmatprep.subr.bf16.mxu0 %v2212_v33 }
 0x306   :  { %2022 = vmatprep.mubr.msk.bf16.mxu0 %vm2686_vm9, %v1775_v42  ;;  %v567_v58 = vsel %vm564_vm11, %v560_v48, %v561_v49  ;;  %v568_v8 = vsel %vm564_vm11, %v563_v6, %v560_v48  ;;  %v2248_v6 = vld [vmem:[%s3032_s5 + $0x70] ss:$8 sps:$4 sm:$0xff]  }
 0x307   :  { %v1789_v62 = vpack.c.bf16 %v566_v53, %v567_v58  ;;  %v1792_v10 = vpack.c.bf16 %v568_v8, %v565_v7  ;;  %v2235_v53 = vld [vmem:[%s3032_s5 + $0x24] ss:$8 sps:$4 sm:$0xff]   ;;  %v2238_v58 = vld [vmem:[%s3032_s5 + $0x34] ss:$8 sps:$4 sm:$0xff]  }
 0x308   :  { %2009 = vmatpush3.bf16.msra.mxu0 %v2212_v33  ;;  %v1432_v7 = vld [vmem:[%s3035_s8 + $0x80] sm:$0xff]  ;;  %v1433_v8 = vld [vmem:[%s3035_s8 + $0x88] sm:$0xff] }
 0x309   :  { %2010 = vmatprep.subr.bf16.mxu0 %v2213_v44 }
 0x30c   :  { %2011 = vmatpush3.bf16.msra.mxu0 %v2213_v44 }
 0x30d   :  { %2012 = vmatprep.subr.bf16.mxu0 %v2214_v45 }
 0x310   :  { %2013 = vmatpush3.bf16.msra.mxu0 %v2214_v45 }
 0x311   :  { %2014 = vmatprep.subr.bf16.mxu0 %v2215_v30 }
 0x314   :  { %2015 = vmatpush3.bf16.msra.mxu0 %v2215_v30 }
 0x315   :  { %2016 = vmatprep.subr.bf16.mxu0 %v2216_v34 }
 0x318   :  { %2017 = vmatpush3.bf16.msra.mxu0 %v2216_v34 }
 0x319   :  { %2018 = vmatprep.subr.bf16.mxu0 %v2217_v37 }
 0x31c   :  { %2019 = vmatpush3.bf16.msra.mxu0 %v2217_v37 }
 0x31d   :  { %2020 = vmatprep.subr.bf16.mxu0 %v2218_v40 }
 0x320   :  { %2021 = vmatpush3.bf16.msra.mxu0 %v2218_v40 }
 0x321   :  { %2026 = vmatprep.subr.bf16.mxu0 %v2219_v47 }
 0x323   :  { %2023 = vmatmul.mubr.msk.bf16.vlgmr.msra.gmra.mrb[8].mxu0 %vm2686_vm9, %v1778_v57  ;;  %v2233_v57 = vld [vmem:[%s3032_s5 + $0x20] ss:$8 sps:$4 sm:$0xff]  }
 0x324   :  { %2027 = vmatpush3.bf16.msra.mxu0 %v2219_v47  ;;  %2042 = vmatprep.mubr.msk.bf16.mxu0 %vm2724_vm12, %v1789_v62  ;;  %v2241_v62 = vld [vmem:[%s3032_s5 + $0x44] ss:$8 sps:$4 sm:$0xff]  }
 0x325   :  { %2028 = vmatprep.subr.bf16.mxu0 %v2220_v61 }
 0x328   :  { %2029 = vmatpush3.bf16.msra.mxu0 %v2220_v61  ;;  %v2239_v61 = vld [vmem:[%s3032_s5 + $0x40] ss:$8 sps:$4 sm:$0xff]  }
 0x329   :  { %2030 = vmatprep.subr.bf16.mxu0 %v2221_v63 }
 0x32c   :  { %2031 = vmatpush3.bf16.msra.mxu0 %v2221_v63  ;;  %v2244_v63 = vld [vmem:[%s3032_s5 + $0x54] ss:$8 sps:$4 sm:$0xff]  }
 0x32d   :  { %2032 = vmatprep.subr.bf16.mxu0 %v2222_v0 }
 0x330   :  { %2033 = vmatpush3.bf16.msra.mxu0 %v2222_v0  ;;  %v2242_v0 = vld [vmem:[%s3032_s5 + $0x50] ss:$8 sps:$4 sm:$0xff]  }
 0x331   :  { %2034 = vmatprep.subr.bf16.mxu0 %v2223_v1 }
 0x334   :  { %2035 = vmatpush3.bf16.msra.mxu0 %v2223_v1  ;;  %v2353_v1 = vmov 0  }
 0x335   :  { %2036 = vmatprep.subr.bf16.mxu0 %v2224_v2 }
 0x338   :  { %2037 = vmatpush3.bf16.msra.mxu0 %v2224_v2  ;;  %v2247_v2 = vld [vmem:[%s3032_s5 + $0x64] ss:$8 sps:$4 sm:$0xff]  }
 0x339   :  { %2038 = vmatprep.subr.bf16.mxu0 %v2225_v3 }
 0x33c   :  { %2039 = vmatpush3.bf16.msra.mxu0 %v2225_v3  ;;  %v2245_v3 = vld [vmem:[%s3032_s5 + $0x60] ss:$8 sps:$4 sm:$0xff]  }
 0x33d   :  { %2040 = vmatprep.subr.bf16.mxu0 %v2226_v5 }
 0x340   :  { %2041 = vmatpush3.bf16.msra.mxu0 %v2226_v5  ;;  %v2250_v5 = vld [vmem:[%s3032_s5 + $0x74] ss:$8 sps:$4 sm:$0xff]  }
 0x343   :  { %2043 = vmatmul.mubr.msk.bf16.vlgmr.msra.gmra.mrb[8].mxu0 %vm2724_vm12, %v1792_v10  ;;  %v2134_v10 = vpack.c.bf16 %v1433_v8, %v1432_v7  ;;  %v1441_v7 = vld [vmem:[%s3035_s8 + $0xc8] sm:$0xff] }
 0x344   :  { %1592 = vmatprep.mubr.f32.mxu0 %v2350_v52 }
 0x416   :  { %v2740_v11 = vpop.f32.mrb[8].mxu0 }
 0x417   :  { %v2742_v13 = vpop.f32.mrb[9].mxu0  ;;  %v942_v15 = vmul.f32 %v2740_v11, %v2740_v11 }
 0x418   :  { %v2744_v14 = vpop.f32.mrb[10].mxu0  ;;  %v940_v19 = vmul.f32 %v2742_v13, %v2742_v13 }
 0x419   :  { %v933_v16 = vadd.f32 %v2744_v14, %v2740_v11  ;;  %v943_v17 = vmul.f32 %v2744_v14, %v2744_v14  ;;  %v2752_v18 = vpop.f32.mrb[11].mxu0 }
 0x41a   :  { %v926_v20 = vadd.f32 %v2752_v18, %v2742_v13  ;;  %v941_v21 = vmul.f32 %v2752_v18, %v2752_v18 }
 0x41b   :  { %v934_v22 = vrot.slane %v933_v16, 4  ;;  %v951_v23 = vadd.f32 %v943_v17, %v942_v15 }
 0x41c   :  { %v927_v24 = vrot.slane %v926_v20, 4  ;;  %v944_v25 = vadd.f32 %v941_v21, %v940_v19 }
 0x41d   :  { %v935_v26 = vadd.f32 %v934_v22, %v933_v16  ;;  %v952_v27 = vrot.slane %v951_v23, 4 }
 0x41e   :  { %v928_v28 = vadd.f32 %v927_v24, %v926_v20  ;;  %v945_v29 = vrot.slane %v944_v25, 4 }
 0x41f   :  { %v936_v56 = vrot.slane %v935_v26, 2  ;;  %v953_v59 = vadd.f32 %v952_v27, %v951_v23 }
 0x420   :  { %v929_v32 = vrot.slane %v928_v28, 2  ;;  %v946_v4 = vadd.f32 %v945_v29, %v944_v25 }
 0x421   :  { %v937_v9 = vadd.f32 %v936_v56, %v935_v26  ;;  %v954_v33 = vrot.slane %v953_v59, 2 }
 0x422   :  { %v930_v35 = vadd.f32 %v929_v32, %v928_v28  ;;  %v947_v36 = vrot.slane %v946_v4, 2 }
 0x423   :  { %v938_v38 = vrot.slane %v937_v9, 1  ;;  %v955_v39 = vadd.f32 %v954_v33, %v953_v59 }
 0x424   :  { %v931_v42 = vrot.slane %v930_v35, 1  ;;  %v948_v44 = vadd.f32 %v947_v36, %v946_v4 }
 0x425   :  { %v939_v45 = vadd.f32 %v938_v38, %v937_v9  ;;  %v956_v30 = vrot.slane %v955_v39, 1 }
 0x426   :  { %v932_v34 = vadd.f32 %v931_v42, %v930_v35  ;;  %v949_v37 = vrot.slane %v948_v44, 1 }
 0x427   :  { %v957_v40 = vadd.f32 %v956_v30, %v955_v39 }
 0x428   :  { %v950_v43 = vadd.f32 %v949_v37, %v948_v44  ;;  %v960_v31 = vsel %vm288_vm1, %v939_v45, %v932_v34 }
 0x42a   :  { %v964_v46 = vsel %vm293_vm2, %v957_v40, %v950_v43 }
 0x42b   :  { %v966_v47 = vsel %vm296_vm3, %v960_v31, %v964_v46  ;;  %v1416_v31 = vld [vmem:[%s3035_s8] sm:$0xff]  ;;  %v1417_v46 = vld [vmem:[%s3035_s8 + $0x8] sm:$0xff] }
 0x42c   :  { %2079 = vmatmul.mubr.f32.vlgmr.msra.gmra.mrb[4].mxu1 %v966_v47  ;;  %v2136_v47 = vpack.c.bf16 %v1417_v46, %v1416_v31 }
 0x42d   :  { %2082 = vmatpush3.msk.msra.mxu1 %vm389_vm4, %v2616_v41  ;;  %2083 = vmatprep.mubr.msk.f32.mxu1 %vm2349_vm0, %v2350_v52  ;;  %v2232_v41 = vld [vmem:[%s3032_s5 + $0x14] ss:$8 sps:$4 sm:$0xff]   ;;  %v2230_v52 = vld [vmem:[%s3032_s5 + $0x10] ss:$8 sps:$4 sm:$0xff]  }
 0x42e   :  { %1281 = vmatprep.subr.bf16.mxu1 %v2229_v50 }
 0x4ff   :  { %v1033_v48 = vpop.f32.mrb[4].mxu1 }
 0x500   :  { %v2080_v49 = vpop.f32.mrb[5].mxu1  ;;  %2084 = vmatmul.mubr.msk.f32.vlgmr.msra.gmra.mrb[6].mxu1 %vm385_vm5, %v1033_v48  ;;  %v1434_v48 = vld [vmem:[%s3035_s8 + $0x90] sm:$0xff] }
 0x501   :  { %1282 = vmatpush1.bf16.msra.mxu1 %v2227_v51  ;;  %1313 = vmatprep.mubr.bf16.mxu1 %v2353_v1  ;;  %v1435_v49 = vld [vmem:[%s3035_s8 + $0x98] sm:$0xff]  ;;  %v1418_v51 = vld [vmem:[%s3035_s8 + $0x10] sm:$0xff] }
 0x502   :  { %1283 = vmatprep.subr.bf16.mxu1 %v2232_v41  ;;  %v2138_v50 = vpack.c.bf16 %v1435_v49, %v1434_v48  ;;  %v1419_v41 = vld [vmem:[%s3035_s8 + $0x18] sm:$0xff] }
 0x505   :  { %1284 = vmatpush1.bf16.msra.mxu1 %v2230_v52  ;;  %v2140_v52 = vpack.c.bf16 %v1419_v41, %v1418_v51 }
 0x506   :  { %1285 = vmatprep.subr.bf16.mxu1 %v2235_v53  ;;  %v1436_v53 = vld [vmem:[%s3035_s8 + $0xa0] sm:$0xff] }
 0x509   :  { %1286 = vmatpush1.bf16.msra.mxu1 %v2233_v57  ;;  %v1437_v57 = vld [vmem:[%s3035_s8 + $0xa8] sm:$0xff] }
 0x50a   :  { %1287 = vmatprep.subr.bf16.mxu1 %v2238_v58  ;;  %v2142_v58 = vpack.c.bf16 %v1437_v57, %v1436_v53 }
 0x50d   :  { %1288 = vmatpush1.bf16.msra.mxu1 %v2236_v60  ;;  %v1420_v60 = vld [vmem:[%s3035_s8 + $0x20] sm:$0xff] }
 0x50e   :  { %1289 = vmatprep.subr.bf16.mxu1 %v2241_v62 }
 0x511   :  { %1290 = vmatpush1.bf16.msra.mxu1 %v2239_v61  ;;  %v1421_v61 = vld [vmem:[%s3035_s8 + $0x28] sm:$0xff] }
 0x512   :  { %1291 = vmatprep.subr.bf16.mxu1 %v2244_v63  ;;  %v2144_v62 = vpack.c.bf16 %v1421_v61, %v1420_v60  ;;  %v1438_v63 = vld [vmem:[%s3035_s8 + $0xb0] sm:$0xff] }
 0x515   :  { %1292 = vmatpush1.bf16.msra.mxu1 %v2242_v0  ;;  %v1439_v0 = vld [vmem:[%s3035_s8 + $0xb8] sm:$0xff] }
 0x516   :  { %1293 = vmatprep.subr.bf16.mxu1 %v2247_v2  ;;  %v1422_v2 = vld [vmem:[%s3035_s8 + $0x30] sm:$0xff] }
 0x519   :  { %1294 = vmatpush1.bf16.msra.mxu1 %v2245_v3  ;;  %v1423_v3 = vld [vmem:[%s3035_s8 + $0x38] sm:$0xff] }
 0x51a   :  { %1295 = vmatprep.subr.bf16.mxu1 %v2250_v5  ;;  %v2148_v5 = vpack.c.bf16 %v1423_v3, %v1422_v2 }
 0x51d   :  { %1296 = vmatpush1.bf16.msra.mxu1 %v2248_v6  ;;  %v1440_v6 = vld [vmem:[%s3035_s8 + $0xc0] sm:$0xff] }
 0x51e   :  { %2135 = vmatprep.subr.bf16.mxu1 %v2134_v10  ;;  %v2150_v8 = vpack.c.bf16 %v1441_v7, %v1440_v6  ;;  %v1424_v10 = vld [vmem:[%s3035_s8 + $0x40] sm:$0xff] }
 0x5d3   :  { %v1106_v15 = vpop.f32.mrb[6].mxu1 }
 0x5d4   :  { %v1117_v16 = vrot.slane %v1106_v15, %v2649_v55  ;;  %v2085_v17 = vpop.f32.mrb[7].mxu1  ;;  %v1425_v15 = vld [vmem:[%s3035_s8 + $0x48] sm:$0xff] }
 0x5d5   :  { %v1442_v17 = vld [vmem:[%s3035_s8 + $0xd0] sm:$0xff] }
 0x5d6   :  { %v1118_v19 = vcombine.high %v1117_v16, %v1117_v16  ;;  %v1125_v20 = vrot.slane %v1117_v16, %v2649_v55  ;;  %v2152_v16 = vpack.c.bf16 %v1425_v15, %v1424_v10 }
 0x5d8   :  { %v1132_v21 = vrot.slane %v1118_v19, %v2649_v55  ;;  %v1135_v22 = vcombine.high %v1125_v20, %v1125_v20  ;;  %v1139_v23 = vmul.f32 %v1125_v20, %v1125_v20  ;;  %v1148_v24 = vrot.slane %v1125_v20, %v2655_v12  ;;  %v1443_v19 = vld [vmem:[%s3035_s8 + $0xd8] sm:$0xff] }
 0x5d9   :  { %v2154_v20 = vpack.c.bf16 %v1443_v19, %v1442_v17 }
 0x5da   :  { %v1136_v25 = vcombine.high %v1132_v21, %v1132_v21  ;;  %v1140_v26 = vmul.f32 %v1132_v21, %v1132_v21  ;;  %v1141_v27 = vsub.f32 %v1135_v22, %v1139_v23  ;;  %v1152_v28 = vrot.slane %v1132_v21, %v2655_v12  ;;  %v1426_v21 = vld [vmem:[%s3035_s8 + $0x50] sm:$0xff]  ;;  %v1427_v22 = vld [vmem:[%s3035_s8 + $0x58] sm:$0xff] }
 0x5db   :  { %v1155_v29 = vsub.f32 %v2742_v13, %v1148_v24  ;;  %v1156_v56 = vsub.f32 %v2752_v18, %v1148_v24  ;;  %v2156_v23 = vpack.c.bf16 %v1427_v22, %v1426_v21  ;;  %v1444_v24 = vld [vmem:[%s3035_s8 + $0xe0] sm:$0xff] }
 0x5dc   :  { %v1142_v59 = vsub.f32 %v1136_v25, %v1140_v26  ;;  %v1143_v32 = vmax.f32 %v1141_v27, 0.0  ;;  %v1157_v4 = vsub.f32 %v2740_v11, %v1152_v28  ;;  %v1158_v9 = vsub.f32 %v2744_v14, %v1152_v28  ;;  %v1445_v25 = vld [vmem:[%s3035_s8 + $0xe8] sm:$0xff]  ;;  %v1428_v27 = vld [vmem:[%s3035_s8 + $0x60] sm:$0xff] }
 0x5dd   :  { %v2158_v26 = vpack.c.bf16 %v1445_v25, %v1444_v24  ;;  %v1429_v28 = vld [vmem:[%s3035_s8 + $0x68] sm:$0xff] }
 0x5de   :  { %v1144_v33 = vmax.f32 %v1142_v59, 0.0  ;;  %v1159_v35 = vadd.f32 1e-05, %v1143_v32  ;;  %v1447_v59 = vld [vmem:[%s3035_s8 + $0xf8] sm:$0xff]  ;;  %v1430_v32 = vld [vmem:[%s3035_s8 + $0x70] sm:$0xff] }
 0x5e0   :  { %v1160_v36 = vadd.f32 1e-05, %v1144_v33  ;;  %2256 = vrsqrt.f32 %v1159_v35  ;;  %v1518_v35 = vld [vmem:[%s3036_s9] sm:$0xff] }
 0x5e2   :  { %2258 = vrsqrt.f32 %v1160_v36  ;;  %v1520_v36 = vcombine.high %v1518_v35, %v1518_v35 }
 0x5e4   :  { %1812 = vmatprep.subr.msk.mxu0 %vm389_vm4, %v1520_v36 }
 0x5e5   :  { %1813 = vmatpush1.msk.msra.mxu0 %vm389_vm4, %v1518_v35 }
 0x5ea   :  { %v2257_v38 = vpop.eup %2256 }
 0x5eb   :  { %v1168_v39 = vrot.slane %v2257_v38, %v2655_v12 }
 0x5ec   :  { %v2259_v42 = vpop.eup %2258 }
 0x5ed   :  { %v1175_v44 = vmul.f32 %v1168_v39, %v1155_v29  ;;  %v1176_v45 = vmul.f32 %v1168_v39, %v1156_v56  ;;  %v1172_v13 = vrot.slane %v2259_v42, %v2655_v12  ;;  %v2160_v29 = vpack.c.bf16 %v1429_v28, %v1428_v27  ;;  %v1446_v56 = vld [vmem:[%s3035_s8 + $0xf0] sm:$0xff] }
 0x5ef   :  { %v1179_v18 = vmax.f32 %v1175_v44, 0.0  ;;  %v1180_v30 = vmax.f32 %v1176_v45, 0.0  ;;  %v1177_v34 = vmul.f32 %v1172_v13, %v1157_v4  ;;  %v1178_v37 = vmul.f32 %v1172_v13, %v1158_v9  ;;  %v1431_v9 = vld [vmem:[%s3035_s8 + $0x78] sm:$0xff] }
 0x5f0   :  { %v2162_v4 = vpack.c.bf16 %v1447_v59, %v1446_v56  ;;  %v2164_v33 = vpack.c.bf16 %v1431_v9, %v1430_v32 }
 0x5f1   :  { %v1183_v11 = vpack.c.bf16 %v1180_v30, %v1179_v18  ;;  %v1181_v40 = vmax.f32 %v1177_v34, 0.0  ;;  %v1182_v14 = vmax.f32 %v1178_v37, 0.0 }
 0x5f3   :  { %1314 = vmatmul.mubr.bf16.vlgmr.msra.gmra.mrb[8].mxu1 %v1183_v11  ;;  %v1184_v43 = vpack.c.bf16 %v1182_v14, %v1181_v40 }
 0x5f4   :  { %1323 = vmatprep.mubr.bf16.mxu1 %v2353_v1  ;;  %2137 = vmatpush3.bf16.msra.mxu1 %v2136_v47  ;;  %v2146_v1 = vpack.c.bf16 %v1439_v0, %v1438_v63 }
 0x5f5   :  { %2139 = vmatprep.subr.bf16.mxu1 %v2138_v50 }
 0x5f8   :  { %2141 = vmatpush3.bf16.msra.mxu1 %v2140_v52 }
 0x5f9   :  { %2143 = vmatprep.subr.bf16.mxu1 %v2142_v58 }
 0x5fb   :  { %1324 = vmatmul.mubr.bf16.gmra.mrb[12].mxu1 %v1184_v43 }
 0x5fc   :  { %2145 = vmatpush3.bf16.msra.mxu1 %v2144_v62 }
 0x5fd   :  { %2147 = vmatprep.subr.bf16.mxu1 %v2146_v1 }
 0x600   :  { %2149 = vmatpush3.bf16.msra.mxu1 %v2148_v5 }
 0x601   :  { %2151 = vmatprep.subr.bf16.mxu1 %v2150_v8 }
 0x604   :  { %2153 = vmatpush3.bf16.msra.mxu1 %v2152_v16 }
 0x605   :  { %2155 = vmatprep.subr.bf16.mxu1 %v2154_v20 }
 0x608   :  { %2157 = vmatpush3.bf16.msra.mxu1 %v2156_v23 }
 0x609   :  { %2159 = vmatprep.subr.bf16.mxu1 %v2158_v26 }
 0x60c   :  { %2161 = vmatpush3.bf16.msra.mxu1 %v2160_v29 }
 0x60d   :  { %2163 = vmatprep.subr.bf16.mxu1 %v2162_v4 }
 0x610   :  { %2165 = vmatpush3.bf16.msra.mxu1 %v2164_v33 }
 0x6c6   :  { %v2928_v38 = vpop.f32.mrb[8].mxu1 }
 0x6c7   :  { %v2930_v39 = vpop.f32.mrb[9].mxu1  ;;  %v1362_v44 = vmul.f32 %v2928_v38, %v2928_v38 }
 0x6c8   :  { %v2932_v42 = vpop.f32.mrb[10].mxu1  ;;  %v1363_v30 = vmul.f32 %v2930_v39, %v2930_v39 }
 0x6c9   :  { %v1334_v45 = vadd.f32 %v2932_v42, %v2928_v38  ;;  %v1364_v13 = vmul.f32 %v2932_v42, %v2932_v42  ;;  %v2940_v18 = vpop.f32.mrb[11].mxu1 }
 0x6ca   :  { %v1341_v34 = vadd.f32 %v2940_v18, %v2930_v39  ;;  %v1365_v37 = vmul.f32 %v2940_v18, %v2940_v18 }
 0x6cb   :  { %v1335_v11 = vrot.slane %v1334_v45, 4  ;;  %v1370_v40 = vadd.f32 %v1364_v13, %v1362_v44 }
 0x6cc   :  { %v1342_v14 = vrot.slane %v1341_v34, 4  ;;  %v1377_v43 = vadd.f32 %v1365_v37, %v1363_v30 }
 0x6cd   :  { %v1336_v31 = vadd.f32 %v1335_v11, %v1334_v45  ;;  %v1371_v46 = vrot.slane %v1370_v40, 4 }
 0x6ce   :  { %v1343_v47 = vadd.f32 %v1342_v14, %v1341_v34  ;;  %v1378_v48 = vrot.slane %v1377_v43, 4  ;;  %v2948_v49 = vpop.f32.mrb[12].mxu1 }
 0x6cf   :  { %v1372_v50 = vadd.f32 %v1371_v46, %v1370_v40  ;;  %v2950_v51 = vpop.f32.mrb[13].mxu1  ;;  %v1337_v53 = vrot.slane %v1336_v31, 2  ;;  %v1366_v57 = vmul.f32 %v2948_v49, %v2948_v49 }
 0x6d0   :  { %v1379_v41 = vadd.f32 %v1378_v48, %v1377_v43  ;;  %v2952_v52 = vpop.f32.mrb[14].mxu1  ;;  %v1344_v62 = vrot.slane %v1343_v47, 2  ;;  %v1367_v63 = vmul.f32 %v2950_v51, %v2950_v51 }
 0x6d1   :  { %v1348_v58 = vadd.f32 %v2952_v52, %v2948_v49  ;;  %v1368_v60 = vmul.f32 %v2952_v52, %v2952_v52  ;;  %v2960_v61 = vpop.f32.mrb[15].mxu1  ;;  %v1373_v2 = vrot.slane %v1372_v50, 2  ;;  %v1338_v10 = vadd.f32 %v1337_v53, %v1336_v31 }
 0x6d2   :  { %v1355_v0 = vadd.f32 %v2960_v61, %v2950_v51  ;;  %v1369_v1 = vmul.f32 %v2960_v61, %v2960_v61  ;;  %v1380_v6 = vrot.slane %v1379_v41, 2  ;;  %v1345_v17 = vadd.f32 %v1344_v62, %v1343_v47 }
 0x6d3   :  { %v1349_v3 = vrot.slane %v1348_v58, 4  ;;  %v1384_v5 = vadd.f32 %v1368_v60, %v1366_v57  ;;  %v1374_v21 = vadd.f32 %v1373_v2, %v1372_v50  ;;  %v1339_v27 = vrot.slane %v1338_v10, 1 }
 0x6d4   :  { %v1356_v7 = vrot.slane %v1355_v0, 4  ;;  %v1391_v8 = vadd.f32 %v1369_v1, %v1367_v63  ;;  %v1381_v24 = vadd.f32 %v1380_v6, %v1379_v41  ;;  %v1346_v56 = vrot.slane %v1345_v17, 1 }
 0x6d5   :  { %v1350_v15 = vadd.f32 %v1349_v3, %v1348_v58  ;;  %v1385_v16 = vrot.slane %v1384_v5, 4  ;;  %v1375_v4 = vrot.slane %v1374_v21, 1  ;;  %v1340_v45 = vadd.f32 %v1339_v27, %v1338_v10 }
 0x6d6   :  { %v1357_v19 = vadd.f32 %v1356_v7, %v1355_v0  ;;  %v1392_v20 = vrot.slane %v1391_v8, 4  ;;  %v1382_v44 = vrot.slane %v1381_v24, 1  ;;  %v1347_v34 = vadd.f32 %v1346_v56, %v1345_v17 }
 0x6d7   :  { %v1351_v22 = vrot.slane %v1350_v15, 2  ;;  %v1386_v23 = vadd.f32 %v1385_v16, %v1384_v5  ;;  %v1376_v40 = vadd.f32 %v1375_v4, %v1374_v21  ;;  %v1642_v2 = vsub.s32 1, %v2646_v54 }
 0x6d8   :  { %v1358_v25 = vrot.slane %v1357_v19, 2  ;;  %v1393_v26 = vadd.f32 %v1392_v20, %v1391_v8  ;;  %v1383_v31 = vadd.f32 %v1382_v44, %v1381_v24 }
 0x6d9   :  { %v1352_v28 = vadd.f32 %v1351_v22, %v1350_v15  ;;  %v1387_v29 = vrot.slane %v1386_v23, 2 }
 0x6da   :  { %v1359_v59 = vadd.f32 %v1358_v25, %v1357_v19  ;;  %v1394_v32 = vrot.slane %v1393_v26, 2 }
 0x6db   :  { %v1353_v9 = vrot.slane %v1352_v28, 1  ;;  %v1388_v33 = vadd.f32 %v1387_v29, %v1386_v23 }
 0x6dc   :  { %v1360_v35 = vrot.slane %v1359_v59, 1  ;;  %v1395_v36 = vadd.f32 %v1394_v32, %v1393_v26 }
 0x6dd   :  { %v1354_v13 = vadd.f32 %v1353_v9, %v1352_v28  ;;  %v1389_v30 = vrot.slane %v1388_v33, 1 }
 0x6de   :  { %v1361_v37 = vadd.f32 %v1360_v35, %v1359_v59  ;;  %v1396_v11 = vrot.slane %v1395_v36, 1 }
 0x6df   :  { %v1390_v14 = vadd.f32 %v1389_v30, %v1388_v33  ;;  %v1402_v43 = vsel %vm288_vm1, %v1354_v13, %v1340_v45  ;;  %v2264_v45 = vld [vmem:[%s3027_s0] sm:$0xff]  ;;  %v2265_v30 = vld [vmem:[%s3027_s0 + $0x8] sm:$0xff] }
 0x6e0   :  { %v1397_v46 = vadd.f32 %v1396_v11, %v1395_v36  ;;  %v1403_v47 = vsel %vm288_vm1, %v1361_v37, %v1347_v34  ;;  %v2267_v11 = vld [vmem:[%s3027_s0 + $0x18] sm:$0xff] }
 0x6e1   :  { %v1410_v48 = vsel %vm293_vm2, %v1390_v14, %v1376_v40  ;;  %v2268_v14 = vld [vmem:[%s3027_s0 + $0x20] sm:$0xff] }
 0x6e2   :  { %v1411_v50 = vsel %vm293_vm2, %v1397_v46, %v1383_v31  ;;  %v1414_v41 = vsel %vm296_vm3, %v1402_v43, %v1410_v48  ;;  %v2269_v31 = vld [vmem:[%s3027_s0 + $0x28] sm:$0xff] }
 0x6e3   :  { %v1415_v53 = vsel %vm296_vm3, %v1403_v47, %v1411_v50  ;;  %v2270_v47 = vld [vmem:[%s3027_s0 + $0x30] sm:$0xff]  ;;  %v2271_v50 = vld [vmem:[%s3027_s0 + $0x38] sm:$0xff] }
 0x6e4   :  { %1512 = vmatprep.mubr.f32.mxu1 %v1415_v53 }
 0x6e5   :  { %1513 = vmatmul.mubr.f32.vlgmr.msra.gmra.mrb[16].mxu1 %v1414_v41 }
 0x7b8   :  { %v1943_v57 = vpop.f32.mrb[16].mxu1 }
 0x7b9   :  { %v1944_v58 = vpop.f32.mrb[17].mxu1 }
 0x7ba   :  { %v1945_v60 = vadd.f32 %v1944_v58, %v1943_v57 }
 0x7bc   :  { %1814 = vmatmul.mubr.msk.f32.vlgmr.msra.gmra.mrb[12].mxu0 %vm385_vm5, %v1945_v60 }
 0x88f   :  { %v1594_v62 = vpop.f32.mrb[12].mxu0 }
 0x890   :  { %v1596_v63 = vpop.f32.mrb[13].mxu0 }
 0x891   :  { %v1601_v0 = vcombine.low %v1594_v62, %v1596_v63 }
 0x893   :  { %v1608_v1 = vrot.slane %v1601_v0, %v2649_v55 }
 0x895   :  { %v1609_v3 = vcombine.high %v1608_v1, %v1608_v1  ;;  %v1616_v5 = vrot.slane %v1608_v1, %v2649_v55 }
 0x897   :  { %v1623_v6 = vrot.slane %v1609_v3, %v2649_v55  ;;  %v1626_v7 = vcombine.high %v1616_v5, %v1616_v5  ;;  %v1630_v8 = vmul.f32 %v1616_v5, %v1616_v5  ;;  %v1639_v10 = vrot.slane %v1616_v5, %v2655_v12 }
 0x898   :  { %v1643_v15 = vrot.slane %v1616_v5, %v1642_v2 }
 0x899   :  { %v1627_v16 = vcombine.high %v1623_v6, %v1623_v6  ;;  %v1631_v17 = vmul.f32 %v1623_v6, %v1623_v6  ;;  %v1632_v19 = vsub.f32 %v1626_v7, %v1630_v8  ;;  %v1647_v20 = vrot.slane %v1623_v6, %v2655_v12 }
 0x89a   :  { %v1651_v21 = vrot.slane %v1623_v6, %v1642_v2  ;;  %v1656_v22 = vsub.f32 %v2928_v38, %v1639_v10  ;;  %v1657_v54 = vsub.f32 %v2930_v39, %v1643_v15  ;;  %v1658_v23 = vsub.f32 %v2932_v42, %v1639_v10 }
 0x89b   :  { %v1633_v24 = vsub.f32 %v1627_v16, %v1631_v17  ;;  %v1634_v25 = vmax.f32 %v1632_v19, 0.0  ;;  %v1659_v55 = vsub.f32 %v2940_v18, %v1643_v15  ;;  %v1660_v26 = vsub.f32 %v2948_v49, %v1647_v20 }
 0x89c   :  { %v1661_v27 = vsub.f32 %v2950_v51, %v1651_v21  ;;  %v1662_v28 = vsub.f32 %v2952_v52, %v1647_v20  ;;  %v1663_v29 = vsub.f32 %v2960_v61, %v1651_v21 }
 0x89d   :  { %v1635_v56 = vmax.f32 %v1633_v24, 0.0  ;;  %v1664_v59 = vadd.f32 1e-05, %v1634_v25 }
 0x89f   :  { %v1665_v32 = vadd.f32 1e-05, %v1635_v56  ;;  %2260 = vrsqrt.f32 %v1664_v59 }
 0x8a1   :  { %2262 = vrsqrt.f32 %v1665_v32 }
 0x8a9   :  { %v2261_v38 = vpop.eup %2260 }
 0x8aa   :  { %v1673_v39 = vrot.slane %v2261_v38, %v2655_v12  ;;  %v1677_v42 = vrot.slane %v2261_v38, %v1642_v2 }
 0x8ab   :  { %v2263_v4 = vpop.eup %2262 }
 0x8ac   :  { %v1681_v18 = vrot.slane %v2263_v4, %v2655_v12  ;;  %v1685_v9 = vrot.slane %v2263_v4, %v1642_v2  ;;  %v1690_v49 = vmul.f32 %v1673_v39, %v1656_v22  ;;  %v1691_v33 = vmul.f32 %v1677_v42, %v1657_v54  ;;  %v2266_v12 = vld [vmem:[%s3027_s0 + $0x10] sm:$0xff] }
 0x8ad   :  { %v1692_v51 = vmul.f32 %v1673_v39, %v1658_v23  ;;  %v1693_v35 = vmul.f32 %v1677_v42, %v1659_v55 }
 0x8ae   :  { %v1694_v52 = vmul.f32 %v1681_v18, %v1660_v26  ;;  %v1695_v36 = vmul.f32 %v1685_v9, %v1661_v27  ;;  %v1696_v61 = vmul.f32 %v1681_v18, %v1662_v28  ;;  %v1697_v44 = vmul.f32 %v1685_v9, %v1663_v29 }
 0x8af   :  { %v1698_v13 = vadd.f32 %v2264_v45, %v1690_v49  ;;  %v1699_v34 = vadd.f32 %v2265_v30, %v1691_v33  ;;  %v1700_v37 = vadd.f32 %v2266_v12, %v1692_v51  ;;  %v1701_v40 = vadd.f32 %v2267_v11, %v1693_v35 }
 0x8b0   :  { %v1702_v43 = vadd.f32 %v2268_v14, %v1694_v52  ;;  %v1703_v46 = vadd.f32 %v2269_v31, %v1695_v36  ;;  %v1704_v48 = vadd.f32 %v2270_v47, %v1696_v61  ;;  %v1705_v41 = vadd.f32 %v2271_v50, %v1697_v44 }
 0x8b1   :  { %v1706_v53 = vmax.f32 %v1698_v13, 0.0  ;;  %v1707_v57 = vmax.f32 %v1699_v34, 0.0  ;;  %v1708_v58 = vmax.f32 %v1700_v37, 0.0  ;;  %v1709_v60 = vmax.f32 %v1701_v40, 0.0 }
 0x8b2   :  { %v1710_v62 = vmax.f32 %v1702_v43, 0.0  ;;  %v1711_v63 = vmax.f32 %v1703_v46, 0.0  ;;  %v1712_v0 = vmax.f32 %v1704_v48, 0.0  ;;  %v1713_v1 = vmax.f32 %v1705_v41, 0.0 }
 0x8b3   :  { %1714 = vst [vmem:[#allocation7] sm:$0xff] %v1706_v53  ;;  %1715 = vst [vmem:[#allocation7 + $0x8] sm:$0xff] %v1707_v57 }
 0x8b4   :  { %1716 = vst [vmem:[#allocation7 + $0x10] sm:$0xff] %v1708_v58  ;;  %1717 = vst [vmem:[#allocation7 + $0x18] sm:$0xff] %v1709_v60 }
 0x8b5   :  { %1718 = vst [vmem:[#allocation7 + $0x20] sm:$0xff] %v1710_v62  ;;  %1719 = vst [vmem:[#allocation7 + $0x28] sm:$0xff] %v1711_v63 }
 0x8b6   :  { %1720 = vst [vmem:[#allocation7 + $0x30] sm:$0xff] %v1712_v0  ;;  %1721 = vst [vmem:[#allocation7 + $0x38] sm:$0xff] %v1713_v1 }
 0x8b7   :  { %2327 = shalt.err (!%p2324_p6)
}
 0x8b8   :  { %s2328_s29 = scalar_lea.hbm %s3037_s10, 1024 }
 0x8b9   :  { %p2329_p7 = scmp.ne.s32.totalorder %s3037_s10, %s2328_s29  ;;  %p2332_p8 = scmp.lt.u32.totalorder %s2328_s29, %s3037_s10 }
 0x8bb   :  { %p2334_p9 = pnand %p2332_p8, %p2329_p7 }
 0x8bd   :  { %2337 = shalt.err (!%p2334_p9)
}
 0x8be   :  { %s2355_s12 = smov 256   ;;  %s2356_s13 = smov 16  }
 0x8bf   :  { %1733 = dma.vmem_to_hbm [thread:$0]  %s1728_s21, 1024, %s3037_s10, [#allocation4], %s2355_s12, %s2355_s12, %s2356_s13  }
 0x8c0   :  { %2342 = dma.done.wait [#allocation4], 1024  }
 0x8c1   :  { %2343 = vsyncadd [#allocation4], 4294966272 }
 0x8c2   :  { %1737 = vsyncpa [#allocation3], 1 }
 0x8c3   :  { %1738 = vsyncpa [#allocation6], 1 }
 0x8c4   :  { %1739 = vsyncpa [#allocation4], 1 }

</bundles_post_ra>
